<compile_context>
chip_gen: v6e
topology: v6e:2x2x1
jax: 0.10.0
libtpu: 0.0.40
codegen_flags: <defaults>
</compile_context>

<pallas_src>
import jax
import jax.numpy as jnp
import numpy as np
from jax import lax
from jax.experimental import pallas as pl
from jax.experimental.pallas import tpu as pltpu


# ----------------------------------------------------------------------------
# Pallas kernel: BiLSTM -> last time step -> BatchNorm1d -> Linear
# ----------------------------------------------------------------------------
def _bilstm_head_kernel(seq_ref,                      # [T, Bt, Hin] (mm dtype)
                        wih_f_ref, whh_f_ref, b_f_ref,
                        wih_b_ref, b_b_ref,           # NOTE: no whh_b (dead)
                        bn_scale_f_ref, bn_shift_f_ref,
                        bn_scale_b_ref, bn_shift_b_ref,
                        fc_wf_ref, fc_wb_ref, fc_b_ref,
                        out_ref,                      # [Bt, C_pad] f32
                        xg_ref):                      # scratch [T*Bt, 4hd] f32
    T, Bt, Hin = seq_ref.shape
    hd = whh_f_ref.shape[0]
    G = 4 * hd

    # ---- Hoisted input projection: one big MXU matmul instead of T tiny ones.
    seq_flat = seq_ref[...].reshape(T * Bt, Hin)
    xg_ref[...] = (jnp.dot(seq_flat, wih_f_ref[...],
                           preferred_element_type=jnp.float32)
                   + b_f_ref[...])

    whh_f = whh_f_ref[...]

    # Lane mask selecting the "g" gate block (lanes [2hd, 3hd)); hoisted so the
    # broadcasted_iota is not re-materialized inside the loop.
    lane = lax.broadcasted_iota(jnp.int32, (Bt, G), 1)
    is_g = (lane >= 2 * hd) & (lane < 3 * hd)

    h0 = jnp.zeros((Bt, hd), jnp.float32)
    c0 = jnp.zeros((Bt, hd), jnp.float32)

    # Forward-direction LSTM recurrence (PyTorch gate order i, f, g, o).
    def step(t, carry):
        h, c = carry
        row = pl.multiple_of(t * Bt, Bt)
        gates = xg_ref[pl.ds(row, Bt), :] + jnp.dot(
            h.astype(whh_f.dtype), whh_f, preferred_element_type=jnp.float32)
        # 2 full-width EUP activations + one select, instead of 4 narrow ones.
        act = jnp.where(is_g, jnp.tanh(gates), jax.nn.sigmoid(gates))
        i = act[:, 0 * hd:1 * hd]
        f = act[:, 1 * hd:2 * hd]
        g = act[:, 2 * hd:3 * hd]
        o = act[:, 3 * hd:4 * hd]
        c_new = f * c + i * g
        h_new = o * jnp.tanh(c_new)
        return h_new, c_new

    h_fwd, _ = lax.fori_loop(0, T, step, (h0, c0), unroll=True)

    # ---- Reverse direction.  Valid ONLY because the module consumes
    # lstm_output[:, -1, :]: for the reverse scan that is its FIRST step from a
    # zero state, so h0 @ W_hh_b and f*c0 are identically zero and W_hh_b is
    # never needed.  Do NOT reuse this if full sequences are ever returned.
    gates_b = (jnp.dot(seq_ref[T - 1], wih_b_ref[...],
                       preferred_element_type=jnp.float32) + b_b_ref[...])
    act_b = jnp.where(is_g, jnp.tanh(gates_b), jax.nn.sigmoid(gates_b))
    i_b = act_b[:, 0 * hd:1 * hd]
    g_b = act_b[:, 2 * hd:3 * hd]
    o_b = act_b[:, 3 * hd:4 * hd]
    h_bwd = o_b * jnp.tanh(i_b * g_b)          # c_new = i*g (f*c0 == 0)

    # ---- BatchNorm1d (eval, folded scale/shift) + Dropout (identity in eval)
    # + Linear.  Split per direction-half to avoid a lane concatenate:
    #   concat([hf, hb]) @ W == hf @ W[:hd] + hb @ W[hd:].
    yf = h_fwd * bn_scale_f_ref[...] + bn_shift_f_ref[...]
    yb = h_bwd * bn_scale_b_ref[...] + bn_shift_b_ref[...]
    mmd = fc_wf_ref.dtype
    out_ref[...] = (jnp.dot(yf.astype(mmd), fc_wf_ref[...],
                            preferred_element_type=jnp.float32)
                    + jnp.dot(yb.astype(mmd), fc_wb_ref[...],
                              preferred_element_type=jnp.float32)
                    + fc_b_ref[...])


def _rep_spec(arr):
    """Full-array block replicated across the batch grid (never re-fetched)."""
    n = arr.ndim
    return pl.BlockSpec(arr.shape, lambda b, _n=n: (0,) * _n)


def bilstm_head(seq_out, params, *, matmul_dtype=jnp.bfloat16, b_tile=8):
    """seq_out: [B, T, Hin] (BERT last_hidden_state). Returns logits [B, C]."""
    B, T, Hin = seq_out.shape
    hd = params["whh_f"].shape[0]
    C = params["fc_w"].shape[1]
    G = 4 * hd
    C_pad = ((C + 127) // 128) * 128            # lane-dense output stores
    B_pad = ((B + b_tile - 1) // b_tile) * b_tile

    # Time-major [T, B, Hin] so each recurrence step reads a contiguous slab.
    # TODO(synk): at production sizes run the hoisted input projection as its
    # own T-gridded streaming pallas_call that writes the gates time-major,
    # removing this XLA transpose pass and keeping seq out of VMEM (v7x 64MiB).
    seq_tbh = jnp.transpose(seq_out, (1, 0, 2)).astype(jnp.float32)
    if B_pad != B:
        seq_tbh = jnp.pad(seq_tbh, ((0, 0), (0, B_pad - B), (0, 0)))
    seq_tbh = seq_tbh.astype(matmul_dtype)

    mmd = matmul_dtype
    wih_f = params["wih_f"].astype(mmd)
    whh_f = params["whh_f"].astype(mmd)
    wih_b = params["wih_b"].astype(mmd)
    b_f = params["b_f"].astype(jnp.float32)
    b_b = params["b_b"].astype(jnp.float32)

    bn_scale = params["bn_scale"].astype(jnp.float32)
    bn_shift = params["bn_shift"].astype(jnp.float32)
    bn_scale_f, bn_scale_b = bn_scale[:, :hd], bn_scale[:, hd:]
    bn_shift_f, bn_shift_b = bn_shift[:, :hd], bn_shift[:, hd:]

    fc_w = jnp.pad(params["fc_w"], ((0, 0), (0, C_pad - C))).astype(mmd)
    fc_wf, fc_wb = fc_w[:hd], fc_w[hd:]
    fc_b = jnp.pad(params["fc_b"], ((0, 0), (0, C_pad - C))).astype(jnp.float32)

    args = (seq_tbh, wih_f, whh_f, b_f, wih_b, b_b,
            bn_scale_f, bn_shift_f, bn_scale_b, bn_shift_b,
            fc_wf, fc_wb, fc_b)

    in_specs = [pl.BlockSpec((T, b_tile, Hin), lambda b: (0, b, 0))]
    in_specs += [_rep_spec(a) for a in args[1:]]
    out_specs = pl.BlockSpec((b_tile, C_pad), lambda b: (b, 0))

    flops = int(2 * T * B_pad * Hin * G          # hoisted input projection
                + 2 * T * B_pad * hd * G         # recurrence h @ W_hh
                + 2 * B_pad * Hin * G            # reverse-direction single step
                + 2 * B_pad * 2 * hd * C_pad)    # FC head
    transcendentals = int((T + 1) * B_pad * (2 * G + hd))
    bytes_accessed = int(sum(a.size * a.dtype.itemsize for a in args)
                         + B_pad * C_pad * 4)

    out = pl.pallas_call(
        _bilstm_head_kernel,
        out_shape=jax.ShapeDtypeStruct((B_pad, C_pad), jnp.float32),
        grid_spec=pltpu.PrefetchScalarGridSpec(
            num_scalar_prefetch=0,
            grid=(B_pad // b_tile,),
            in_specs=in_specs,
            out_specs=out_specs,
            scratch_shapes=[pltpu.VMEM((T * b_tile, G), jnp.float32)],
        ),
        compiler_params=pltpu.CompilerParams(
            dimension_semantics=("parallel",),
            vmem_limit_bytes=32 * 1024 * 1024,
        ),
        cost_estimate=pl.CostEstimate(
            flops=flops, transcendentals=transcendentals,
            bytes_accessed=bytes_accessed),
    )(*args)
    return out[:B, :C]


# ----------------------------------------------------------------------------
# Full module forward (glue in plain JAX)
# ----------------------------------------------------------------------------
def finbert_bilstm_forward(params, input_ids, attention_mask, *,
                           matmul_dtype=jnp.bfloat16):
    # TODO(synk): the frozen 12-layer pretrained FinBERT encoder is not
    # reproduced; a deterministic embedding table stands in for
    # bert(input_ids, attention_mask).last_hidden_state.
    del attention_mask  # only consumed inside the real BERT's attention
    seq_out = params["embedding"][input_ids]          # [B, T, bert_hidden]
    return bilstm_head(seq_out, params, matmul_dtype=matmul_dtype)


# ----------------------------------------------------------------------------
# Deterministic parameter init (mirrors the nn.Module's shapes, transposed to
# the [in, out] layout the kernel uses)
# ----------------------------------------------------------------------------
def init_params(key, vocab, bert_hidden, hidden_dim, num_classes):
    ks = jax.random.split(key, 13)

    def u(k, shape, bound):
        return jax.random.uniform(k, shape, jnp.float32, -bound, bound)

    k_lstm = 1.0 / np.sqrt(hidden_dim)
    k_fc = 1.0 / np.sqrt(2 * hidden_dim)

    # BatchNorm1d(2*hidden_dim), eval mode: fold gamma/beta/running stats.
    gamma = 1.0 + u(ks[7], (1, 2 * hidden_dim), 0.5)
    beta = u(ks[8], (1, 2 * hidden_dim), 0.1)
    run_mean = u(ks[9], (1, 2 * hidden_dim), 0.1)
    run_var = 1.0 + u(ks[10], (1, 2 * hidden_dim), 0.5)
    eps = 1e-5
    bn_scale = gamma / jnp.sqrt(run_var + eps)
    bn_shift = beta - run_mean * bn_scale

    return dict(
        embedding=u(ks[0], (vocab, bert_hidden), 0.1),
        # nn.LSTM(bert_hidden, hidden_dim, bidirectional=True)
        wih_f=u(ks[1], (bert_hidden, 4 * hidden_dim), k_lstm),
        whh_f=u(ks[2], (hidden_dim, 4 * hidden_dim), k_lstm),
        b_f=u(ks[3], (1, 4 * hidden_dim), k_lstm),    # bias_ih + bias_hh folded
        wih_b=u(ks[4], (bert_hidden, 4 * hidden_dim), k_lstm),
        # whh_b exists in the nn.Module but never affects the logits: only the
        # last time step is kept, which for the reverse direction is its first
        # step from a zero state, so h0 @ whh_b == 0.  Kept for fidelity only.
        whh_b=u(ks[5], (hidden_dim, 4 * hidden_dim), k_lstm),
        b_b=u(ks[6], (1, 4 * hidden_dim), k_lstm),
        bn_scale=bn_scale,
        bn_shift=bn_shift,
        # nn.Linear(2*hidden_dim, num_classes)
        fc_w=u(ks[11], (2 * hidden_dim, num_classes), k_fc),
        fc_b=jnp.zeros((1, num_classes), jnp.float32),
    )


# ----------------------------------------------------------------------------
# Pure-JAX f32 reference (same math) for a correctness check
# ----------------------------------------------------------------------------
def reference_forward(params, input_ids, attention_mask):
    del attention_mask
    seq = params["embedding"][input_ids].astype(jnp.float32)   # [B, T, H]
    B, T, _ = seq.shape
    hd = params["whh_f"].shape[0]

    def cell(x, h, c, wih, whh, b):
        g = x @ wih + h @ whh + b
        i = jax.nn.sigmoid(g[:, :hd])
        f = jax.nn.sigmoid(g[:, hd:2 * hd])
        gg = jnp.tanh(g[:, 2 * hd:3 * hd])
        o = jax.nn.sigmoid(g[:, 3 * hd:])
        c = f * c + i * gg
        return o * jnp.tanh(c), c

    h = jnp.zeros((B, hd), jnp.float32)
    c = jnp.zeros((B, hd), jnp.float32)
    for t in range(T):
        h, c = cell(seq[:, t, :], h, c,
                    params["wih_f"], params["whh_f"], params["b_f"])
    hb, _ = cell(seq[:, T - 1, :], jnp.zeros((B, hd), jnp.float32),
                 jnp.zeros((B, hd), jnp.float32),
                 params["wih_b"], params["whh_b"], params["b_b"])
    last = jnp.concatenate([h, hb], axis=-1)
    y = last * params["bn_scale"] + params["bn_shift"]
    return y @ params["fc_w"] + params["fc_b"]


# ----------------------------------------------------------------------------
if __name__ == "__main__":
    B, T, VOCAB = 4, 8, 100
    BERT_HIDDEN, HIDDEN_DIM, NUM_CLASSES = 64, 32, 3

    key = jax.random.PRNGKey(0)
    kp, kid = jax.random.split(key)
    params = init_params(kp, VOCAB, BERT_HIDDEN, HIDDEN_DIM, NUM_CLASSES)

    input_ids = jax.random.randint(kid, (B, T), 0, VOCAB, dtype=jnp.int32)
    attention_mask = jnp.ones((B, T), jnp.int32)

    ref = reference_forward(params, input_ids, attention_mask)

    # Strict correctness check with f32 matmuls.
    logits_f32 = finbert_bilstm_forward(params, input_ids, attention_mask,
                                        matmul_dtype=jnp.float32)
    jax.block_until_ready(logits_f32)
    np.testing.assert_allclose(np.asarray(logits_f32), np.asarray(ref),
                               rtol=1e-4, atol=1e-4)

    # Default fast path: bf16 MXU operands, f32 accumulation / epilogue.
    logits_bf16 = finbert_bilstm_forward(params, input_ids, attention_mask)
    jax.block_until_ready(logits_bf16)
    np.testing.assert_allclose(np.asarray(logits_bf16), np.asarray(ref),
                               rtol=5e-2, atol=5e-2)

    print("KERNEL_OK")
</pallas_src>

<mosaic_0001>
module attributes {stable_mosaic.version = 11 : i64} {
  func.func @_bilstm_head_kernel(%arg0: i32, %arg1: memref<8x8x64xf32, #tpu.memory_space<vmem>>, %arg2: memref<64x128xf32, #tpu.memory_space<vmem>>, %arg3: memref<32x128xf32, #tpu.memory_space<vmem>>, %arg4: memref<1x128xf32, #tpu.memory_space<vmem>>, %arg5: memref<64x128xf32, #tpu.memory_space<vmem>>, %arg6: memref<1x128xf32, #tpu.memory_space<vmem>>, %arg7: memref<1x32xf32, #tpu.memory_space<vmem>>, %arg8: memref<1x32xf32, #tpu.memory_space<vmem>>, %arg9: memref<1x32xf32, #tpu.memory_space<vmem>>, %arg10: memref<1x32xf32, #tpu.memory_space<vmem>>, %arg11: memref<32x128xf32, #tpu.memory_space<vmem>>, %arg12: memref<32x128xf32, #tpu.memory_space<vmem>>, %arg13: memref<1x128xf32, #tpu.memory_space<vmem>>, %arg14: memref<8x128xf32, #tpu.memory_space<vmem>>, %arg15: memref<64x128xf32, #tpu.memory_space<vmem>>) attributes {dimension_semantics = [#tpu.dimension_semantics<parallel>], iteration_bounds = array<i64: 1>, scalar_prefetch = 0 : i64, scratch_operands = 1 : i64, tpu.core_type = #tpu.core_type<tc>, window_params = [{transform_indices = @transform_0, window_bounds = array<i64: 8, 8, 64>}, {pipeline_mode = #tpu.pipeline_mode<synchronous>, transform_indices = @transform_1, window_bounds = array<i64: 64, 128>}, {pipeline_mode = #tpu.pipeline_mode<synchronous>, transform_indices = @transform_2, window_bounds = array<i64: 32, 128>}, {pipeline_mode = #tpu.pipeline_mode<synchronous>, transform_indices = @transform_3, window_bounds = array<i64: 1, 128>}, {pipeline_mode = #tpu.pipeline_mode<synchronous>, transform_indices = @transform_4, window_bounds = array<i64: 64, 128>}, {pipeline_mode = #tpu.pipeline_mode<synchronous>, transform_indices = @transform_5, window_bounds = array<i64: 1, 128>}, {pipeline_mode = #tpu.pipeline_mode<synchronous>, transform_indices = @transform_6, window_bounds = array<i64: 1, 32>}, {pipeline_mode = #tpu.pipeline_mode<synchronous>, transform_indices = @transform_7, window_bounds = array<i64: 1, 32>}, {pipeline_mode = #tpu.pipeline_mode<synchronous>, transform_indices = @transform_8, window_bounds = array<i64: 1, 32>}, {pipeline_mode = #tpu.pipeline_mode<synchronous>, transform_indices = @transform_9, window_bounds = array<i64: 1, 32>}, {pipeline_mode = #tpu.pipeline_mode<synchronous>, transform_indices = @transform_10, window_bounds = array<i64: 32, 128>}, {pipeline_mode = #tpu.pipeline_mode<synchronous>, transform_indices = @transform_11, window_bounds = array<i64: 32, 128>}, {pipeline_mode = #tpu.pipeline_mode<synchronous>, transform_indices = @transform_12, window_bounds = array<i64: 1, 128>}, {transform_indices = @transform_13, window_bounds = array<i64: 8, 128>}]} {
    %c0 = arith.constant 0 : index
    %c0_0 = arith.constant 0 : index
    %c0_1 = arith.constant 0 : index
    %0 = vector.load %arg1[%c0, %c0_0, %c0_1] : memref<8x8x64xf32, #tpu.memory_space<vmem>>, vector<8x8x64xf32>
    %1 = vector.shape_cast %0 : vector<8x8x64xf32> to vector<64x64xf32>
    %c0_2 = arith.constant 0 : index
    %c0_3 = arith.constant 0 : index
    %2 = vector.load %arg2[%c0_2, %c0_3] : memref<64x128xf32, #tpu.memory_space<vmem>>, vector<64x128xf32>
    %cst = arith.constant dense<0.000000e+00> : vector<64x128xf32>
    %3 = tpu.matmul %1, %2, %cst {dimension_numbers = #tpu.dot_dimension_numbers<[1], [0], [0], [1], [0, 0, 1, 1], [], []>} : vector<64x64xf32>, vector<64x128xf32>, vector<64x128xf32> -> vector<64x128xf32>
    %c0_4 = arith.constant 0 : index
    %c0_5 = arith.constant 0 : index
    %4 = vector.load %arg4[%c0_4, %c0_5] : memref<1x128xf32, #tpu.memory_space<vmem>>, vector<1x128xf32>
    %5 = vector.broadcast %4 : vector<1x128xf32> to vector<64x128xf32>
    %6 = arith.addf %3, %5 : vector<64x128xf32>
    %c0_6 = arith.constant 0 : index
    %c0_7 = arith.constant 0 : index
    %7 = vector.load %arg15[%c0_6, %c0_7] : memref<64x128xf32, #tpu.memory_space<vmem>>, vector<64x128xf32>
    tpu.vector_store %arg15[%c0_6, %c0_7], %6 {strides = array<i32>} : memref<64x128xf32, #tpu.memory_space<vmem>>, vector<64x128xf32>,
    %c0_8 = arith.constant 0 : index
    %c0_9 = arith.constant 0 : index
    %8 = vector.load %arg3[%c0_8, %c0_9] : memref<32x128xf32, #tpu.memory_space<vmem>>, vector<32x128xf32>
    %9 = tpu.iota {dimensions = array<i32: 1>} : vector<8x128xi32>
    %c64_i32 = arith.constant 64 : i32
    %10 = vector.broadcast %c64_i32 : i32 to vector<8x128xi32>
    %11 = arith.cmpi sge, %9, %10 : vector<8x128xi32>
    %c96_i32 = arith.constant 96 : i32
    %12 = vector.broadcast %c96_i32 : i32 to vector<8x128xi32>
    %13 = arith.cmpi slt, %9, %12 : vector<8x128xi32>
    %14 = arith.andi %11, %13 : vector<8x128xi1>
    %cst_10 = arith.constant 0.000000e+00 : f32
    %15 = vector.broadcast %cst_10 : f32 to vector<8x32xf32>
    %cst_11 = arith.constant 0.000000e+00 : f32
    %16 = vector.broadcast %cst_11 : f32 to vector<8x32xf32>
    %c0_i32 = arith.constant 0 : i32
    %c8_i32 = arith.constant 8 : i32
    %17 = arith.muli %c0_i32, %c8_i32 : i32
    %18 = tpu.assume_multiple %17, 8 : i32
    %19 = arith.index_cast %18 : i32 to index
    %c0_12 = arith.constant 0 : index
    %20 = vector.load %arg15[%19, %c0_12] : memref<64x128xf32, #tpu.memory_space<vmem>>, vector<8x128xf32>
    %cst_13 = arith.constant dense<0.000000e+00> : vector<8x128xf32>
    %21 = tpu.matmul %15, %8, %cst_13 {dimension_numbers = #tpu.dot_dimension_numbers<[1], [0], [0], [1], [0, 0, 1, 1], [], []>} : vector<8x32xf32>, vector<32x128xf32>, vector<8x128xf32> -> vector<8x128xf32>
    %22 = arith.addf %20, %21 : vector<8x128xf32>
    %23 = math.tanh %22 : vector<8x128xf32>
    %24 = arith.negf %22 : vector<8x128xf32>
    %25 = math.exp %24 : vector<8x128xf32>
    %cst_14 = arith.constant 1.000000e+00 : f32
    %26 = vector.broadcast %cst_14 : f32 to vector<8x128xf32>
    %27 = arith.addf %26, %25 : vector<8x128xf32>
    %28 = arith.divf %26, %27 : vector<8x128xf32>
    %29 = arith.select %14, %23, %28 : vector<8x128xi1>, vector<8x128xf32>
    %30 = vector.extract_strided_slice %29 {offsets = [0, 0], sizes = [8, 32], strides = [1, 1]} : vector<8x128xf32> to vector<8x32xf32>
    %31 = vector.extract_strided_slice %29 {offsets = [0, 32], sizes = [8, 32], strides = [1, 1]} : vector<8x128xf32> to vector<8x32xf32>
    %32 = vector.extract_strided_slice %29 {offsets = [0, 64], sizes = [8, 32], strides = [1, 1]} : vector<8x128xf32> to vector<8x32xf32>
    %33 = vector.extract_strided_slice %29 {offsets = [0, 96], sizes = [8, 32], strides = [1, 1]} : vector<8x128xf32> to vector<8x32xf32>
    %34 = arith.mulf %31, %16 : vector<8x32xf32>
    %35 = arith.mulf %30, %32 : vector<8x32xf32>
    %36 = arith.addf %34, %35 : vector<8x32xf32>
    %37 = math.tanh %36 : vector<8x32xf32>
    %38 = arith.mulf %33, %37 : vector<8x32xf32>
    %c1_i32 = arith.constant 1 : i32
    %c8_i32_15 = arith.constant 8 : i32
    %39 = arith.muli %c1_i32, %c8_i32_15 : i32
    %40 = tpu.assume_multiple %39, 8 : i32
    %41 = arith.index_cast %40 : i32 to index
    %c0_16 = arith.constant 0 : index
    %42 = vector.load %arg15[%41, %c0_16] : memref<64x128xf32, #tpu.memory_space<vmem>>, vector<8x128xf32>
    %cst_17 = arith.constant dense<0.000000e+00> : vector<8x128xf32>
    %43 = tpu.matmul %38, %8, %cst_17 {dimension_numbers = #tpu.dot_dimension_numbers<[1], [0], [0], [1], [0, 0, 1, 1], [], []>} : vector<8x32xf32>, vector<32x128xf32>, vector<8x128xf32> -> vector<8x128xf32>
    %44 = arith.addf %42, %43 : vector<8x128xf32>
    %45 = math.tanh %44 : vector<8x128xf32>
    %46 = arith.negf %44 : vector<8x128xf32>
    %47 = math.exp %46 : vector<8x128xf32>
    %cst_18 = arith.constant 1.000000e+00 : f32
    %48 = vector.broadcast %cst_18 : f32 to vector<8x128xf32>
    %49 = arith.addf %48, %47 : vector<8x128xf32>
    %50 = arith.divf %48, %49 : vector<8x128xf32>
    %51 = arith.select %14, %45, %50 : vector<8x128xi1>, vector<8x128xf32>
    %52 = vector.extract_strided_slice %51 {offsets = [0, 0], sizes = [8, 32], strides = [1, 1]} : vector<8x128xf32> to vector<8x32xf32>
    %53 = vector.extract_strided_slice %51 {offsets = [0, 32], sizes = [8, 32], strides = [1, 1]} : vector<8x128xf32> to vector<8x32xf32>
    %54 = vector.extract_strided_slice %51 {offsets = [0, 64], sizes = [8, 32], strides = [1, 1]} : vector<8x128xf32> to vector<8x32xf32>
    %55 = vector.extract_strided_slice %51 {offsets = [0, 96], sizes = [8, 32], strides = [1, 1]} : vector<8x128xf32> to vector<8x32xf32>
    %56 = arith.mulf %53, %36 : vector<8x32xf32>
    %57 = arith.mulf %52, %54 : vector<8x32xf32>
    %58 = arith.addf %56, %57 : vector<8x32xf32>
    %59 = math.tanh %58 : vector<8x32xf32>
    %60 = arith.mulf %55, %59 : vector<8x32xf32>
    %c2_i32 = arith.constant 2 : i32
    %c8_i32_19 = arith.constant 8 : i32
    %61 = arith.muli %c2_i32, %c8_i32_19 : i32
    %62 = tpu.assume_multiple %61, 8 : i32
    %63 = arith.index_cast %62 : i32 to index
    %c0_20 = arith.constant 0 : index
    %64 = vector.load %arg15[%63, %c0_20] : memref<64x128xf32, #tpu.memory_space<vmem>>, vector<8x128xf32>
    %cst_21 = arith.constant dense<0.000000e+00> : vector<8x128xf32>
    %65 = tpu.matmul %60, %8, %cst_21 {dimension_numbers = #tpu.dot_dimension_numbers<[1], [0], [0], [1], [0, 0, 1, 1], [], []>} : vector<8x32xf32>, vector<32x128xf32>, vector<8x128xf32> -> vector<8x128xf32>
    %66 = arith.addf %64, %65 : vector<8x128xf32>
    %67 = math.tanh %66 : vector<8x128xf32>
    %68 = arith.negf %66 : vector<8x128xf32>
    %69 = math.exp %68 : vector<8x128xf32>
    %cst_22 = arith.constant 1.000000e+00 : f32
    %70 = vector.broadcast %cst_22 : f32 to vector<8x128xf32>
    %71 = arith.addf %70, %69 : vector<8x128xf32>
    %72 = arith.divf %70, %71 : vector<8x128xf32>
    %73 = arith.select %14, %67, %72 : vector<8x128xi1>, vector<8x128xf32>
    %74 = vector.extract_strided_slice %73 {offsets = [0, 0], sizes = [8, 32], strides = [1, 1]} : vector<8x128xf32> to vector<8x32xf32>
    %75 = vector.extract_strided_slice %73 {offsets = [0, 32], sizes = [8, 32], strides = [1, 1]} : vector<8x128xf32> to vector<8x32xf32>
    %76 = vector.extract_strided_slice %73 {offsets = [0, 64], sizes = [8, 32], strides = [1, 1]} : vector<8x128xf32> to vector<8x32xf32>
    %77 = vector.extract_strided_slice %73 {offsets = [0, 96], sizes = [8, 32], strides = [1, 1]} : vector<8x128xf32> to vector<8x32xf32>
    %78 = arith.mulf %75, %58 : vector<8x32xf32>
    %79 = arith.mulf %74, %76 : vector<8x32xf32>
    %80 = arith.addf %78, %79 : vector<8x32xf32>
    %81 = math.tanh %80 : vector<8x32xf32>
    %82 = arith.mulf %77, %81 : vector<8x32xf32>
    %c3_i32 = arith.constant 3 : i32
    %c8_i32_23 = arith.constant 8 : i32
    %83 = arith.muli %c3_i32, %c8_i32_23 : i32
    %84 = tpu.assume_multiple %83, 8 : i32
    %85 = arith.index_cast %84 : i32 to index
    %c0_24 = arith.constant 0 : index
    %86 = vector.load %arg15[%85, %c0_24] : memref<64x128xf32, #tpu.memory_space<vmem>>, vector<8x128xf32>
    %cst_25 = arith.constant dense<0.000000e+00> : vector<8x128xf32>
    %87 = tpu.matmul %82, %8, %cst_25 {dimension_numbers = #tpu.dot_dimension_numbers<[1], [0], [0], [1], [0, 0, 1, 1], [], []>} : vector<8x32xf32>, vector<32x128xf32>, vector<8x128xf32> -> vector<8x128xf32>
    %88 = arith.addf %86, %87 : vector<8x128xf32>
    %89 = math.tanh %88 : vector<8x128xf32>
    %90 = arith.negf %88 : vector<8x128xf32>
    %91 = math.exp %90 : vector<8x128xf32>
    %cst_26 = arith.constant 1.000000e+00 : f32
    %92 = vector.broadcast %cst_26 : f32 to vector<8x128xf32>
    %93 = arith.addf %92, %91 : vector<8x128xf32>
    %94 = arith.divf %92, %93 : vector<8x128xf32>
    %95 = arith.select %14, %89, %94 : vector<8x128xi1>, vector<8x128xf32>
    %96 = vector.extract_strided_slice %95 {offsets = [0, 0], sizes = [8, 32], strides = [1, 1]} : vector<8x128xf32> to vector<8x32xf32>
    %97 = vector.extract_strided_slice %95 {offsets = [0, 32], sizes = [8, 32], strides = [1, 1]} : vector<8x128xf32> to vector<8x32xf32>
    %98 = vector.extract_strided_slice %95 {offsets = [0, 64], sizes = [8, 32], strides = [1, 1]} : vector<8x128xf32> to vector<8x32xf32>
    %99 = vector.extract_strided_slice %95 {offsets = [0, 96], sizes = [8, 32], strides = [1, 1]} : vector<8x128xf32> to vector<8x32xf32>
    %100 = arith.mulf %97, %80 : vector<8x32xf32>
    %101 = arith.mulf %96, %98 : vector<8x32xf32>
    %102 = arith.addf %100, %101 : vector<8x32xf32>
    %103 = math.tanh %102 : vector<8x32xf32>
    %104 = arith.mulf %99, %103 : vector<8x32xf32>
    %c4_i32 = arith.constant 4 : i32
    %c8_i32_27 = arith.constant 8 : i32
    %105 = arith.muli %c4_i32, %c8_i32_27 : i32
    %106 = tpu.assume_multiple %105, 8 : i32
    %107 = arith.index_cast %106 : i32 to index
    %c0_28 = arith.constant 0 : index
    %108 = vector.load %arg15[%107, %c0_28] : memref<64x128xf32, #tpu.memory_space<vmem>>, vector<8x128xf32>
    %cst_29 = arith.constant dense<0.000000e+00> : vector<8x128xf32>
    %109 = tpu.matmul %104, %8, %cst_29 {dimension_numbers = #tpu.dot_dimension_numbers<[1], [0], [0], [1], [0, 0, 1, 1], [], []>} : vector<8x32xf32>, vector<32x128xf32>, vector<8x128xf32> -> vector<8x128xf32>
    %110 = arith.addf %108, %109 : vector<8x128xf32>
    %111 = math.tanh %110 : vector<8x128xf32>
    %112 = arith.negf %110 : vector<8x128xf32>
    %113 = math.exp %112 : vector<8x128xf32>
    %cst_30 = arith.constant 1.000000e+00 : f32
    %114 = vector.broadcast %cst_30 : f32 to vector<8x128xf32>
    %115 = arith.addf %114, %113 : vector<8x128xf32>
    %116 = arith.divf %114, %115 : vector<8x128xf32>
    %117 = arith.select %14, %111, %116 : vector<8x128xi1>, vector<8x128xf32>
    %118 = vector.extract_strided_slice %117 {offsets = [0, 0], sizes = [8, 32], strides = [1, 1]} : vector<8x128xf32> to vector<8x32xf32>
    %119 = vector.extract_strided_slice %117 {offsets = [0, 32], sizes = [8, 32], strides = [1, 1]} : vector<8x128xf32> to vector<8x32xf32>
    %120 = vector.extract_strided_slice %117 {offsets = [0, 64], sizes = [8, 32], strides = [1, 1]} : vector<8x128xf32> to vector<8x32xf32>
    %121 = vector.extract_strided_slice %117 {offsets = [0, 96], sizes = [8, 32], strides = [1, 1]} : vector<8x128xf32> to vector<8x32xf32>
    %122 = arith.mulf %119, %102 : vector<8x32xf32>
    %123 = arith.mulf %118, %120 : vector<8x32xf32>
    %124 = arith.addf %122, %123 : vector<8x32xf32>
    %125 = math.tanh %124 : vector<8x32xf32>
    %126 = arith.mulf %121, %125 : vector<8x32xf32>
    %c5_i32 = arith.constant 5 : i32
    %c8_i32_31 = arith.constant 8 : i32
    %127 = arith.muli %c5_i32, %c8_i32_31 : i32
    %128 = tpu.assume_multiple %127, 8 : i32
    %129 = arith.index_cast %128 : i32 to index
    %c0_32 = arith.constant 0 : index
    %130 = vector.load %arg15[%129, %c0_32] : memref<64x128xf32, #tpu.memory_space<vmem>>, vector<8x128xf32>
    %cst_33 = arith.constant dense<0.000000e+00> : vector<8x128xf32>
    %131 = tpu.matmul %126, %8, %cst_33 {dimension_numbers = #tpu.dot_dimension_numbers<[1], [0], [0], [1], [0, 0, 1, 1], [], []>} : vector<8x32xf32>, vector<32x128xf32>, vector<8x128xf32> -> vector<8x128xf32>
    %132 = arith.addf %130, %131 : vector<8x128xf32>
    %133 = math.tanh %132 : vector<8x128xf32>
    %134 = arith.negf %132 : vector<8x128xf32>
    %135 = math.exp %134 : vector<8x128xf32>
    %cst_34 = arith.constant 1.000000e+00 : f32
    %136 = vector.broadcast %cst_34 : f32 to vector<8x128xf32>
    %137 = arith.addf %136, %135 : vector<8x128xf32>
    %138 = arith.divf %136, %137 : vector<8x128xf32>
    %139 = arith.select %14, %133, %138 : vector<8x128xi1>, vector<8x128xf32>
    %140 = vector.extract_strided_slice %139 {offsets = [0, 0], sizes = [8, 32], strides = [1, 1]} : vector<8x128xf32> to vector<8x32xf32>
    %141 = vector.extract_strided_slice %139 {offsets = [0, 32], sizes = [8, 32], strides = [1, 1]} : vector<8x128xf32> to vector<8x32xf32>
    %142 = vector.extract_strided_slice %139 {offsets = [0, 64], sizes = [8, 32], strides = [1, 1]} : vector<8x128xf32> to vector<8x32xf32>
    %143 = vector.extract_strided_slice %139 {offsets = [0, 96], sizes = [8, 32], strides = [1, 1]} : vector<8x128xf32> to vector<8x32xf32>
    %144 = arith.mulf %141, %124 : vector<8x32xf32>
    %145 = arith.mulf %140, %142 : vector<8x32xf32>
    %146 = arith.addf %144, %145 : vector<8x32xf32>
    %147 = math.tanh %146 : vector<8x32xf32>
    %148 = arith.mulf %143, %147 : vector<8x32xf32>
    %c6_i32 = arith.constant 6 : i32
    %c8_i32_35 = arith.constant 8 : i32
    %149 = arith.muli %c6_i32, %c8_i32_35 : i32
    %150 = tpu.assume_multiple %149, 8 : i32
    %151 = arith.index_cast %150 : i32 to index
    %c0_36 = arith.constant 0 : index
    %152 = vector.load %arg15[%151, %c0_36] : memref<64x128xf32, #tpu.memory_space<vmem>>, vector<8x128xf32>
    %cst_37 = arith.constant dense<0.000000e+00> : vector<8x128xf32>
    %153 = tpu.matmul %148, %8, %cst_37 {dimension_numbers = #tpu.dot_dimension_numbers<[1], [0], [0], [1], [0, 0, 1, 1], [], []>} : vector<8x32xf32>, vector<32x128xf32>, vector<8x128xf32> -> vector<8x128xf32>
    %154 = arith.addf %152, %153 : vector<8x128xf32>
    %155 = math.tanh %154 : vector<8x128xf32>
    %156 = arith.negf %154 : vector<8x128xf32>
    %157 = math.exp %156 : vector<8x128xf32>
    %cst_38 = arith.constant 1.000000e+00 : f32
    %158 = vector.broadcast %cst_38 : f32 to vector<8x128xf32>
    %159 = arith.addf %158, %157 : vector<8x128xf32>
    %160 = arith.divf %158, %159 : vector<8x128xf32>
    %161 = arith.select %14, %155, %160 : vector<8x128xi1>, vector<8x128xf32>
    %162 = vector.extract_strided_slice %161 {offsets = [0, 0], sizes = [8, 32], strides = [1, 1]} : vector<8x128xf32> to vector<8x32xf32>
    %163 = vector.extract_strided_slice %161 {offsets = [0, 32], sizes = [8, 32], strides = [1, 1]} : vector<8x128xf32> to vector<8x32xf32>
    %164 = vector.extract_strided_slice %161 {offsets = [0, 64], sizes = [8, 32], strides = [1, 1]} : vector<8x128xf32> to vector<8x32xf32>
    %165 = vector.extract_strided_slice %161 {offsets = [0, 96], sizes = [8, 32], strides = [1, 1]} : vector<8x128xf32> to vector<8x32xf32>
    %166 = arith.mulf %163, %146 : vector<8x32xf32>
    %167 = arith.mulf %162, %164 : vector<8x32xf32>
    %168 = arith.addf %166, %167 : vector<8x32xf32>
    %169 = math.tanh %168 : vector<8x32xf32>
    %170 = arith.mulf %165, %169 : vector<8x32xf32>
    %c7_i32 = arith.constant 7 : i32
    %c8_i32_39 = arith.constant 8 : i32
    %171 = arith.muli %c7_i32, %c8_i32_39 : i32
    %172 = tpu.assume_multiple %171, 8 : i32
    %173 = arith.index_cast %172 : i32 to index
    %c0_40 = arith.constant 0 : index
    %174 = vector.load %arg15[%173, %c0_40] : memref<64x128xf32, #tpu.memory_space<vmem>>, vector<8x128xf32>
    %cst_41 = arith.constant dense<0.000000e+00> : vector<8x128xf32>
    %175 = tpu.matmul %170, %8, %cst_41 {dimension_numbers = #tpu.dot_dimension_numbers<[1], [0], [0], [1], [0, 0, 1, 1], [], []>} : vector<8x32xf32>, vector<32x128xf32>, vector<8x128xf32> -> vector<8x128xf32>
    %176 = arith.addf %174, %175 : vector<8x128xf32>
    %177 = math.tanh %176 : vector<8x128xf32>
    %178 = arith.negf %176 : vector<8x128xf32>
    %179 = math.exp %178 : vector<8x128xf32>
    %cst_42 = arith.constant 1.000000e+00 : f32
    %180 = vector.broadcast %cst_42 : f32 to vector<8x128xf32>
    %181 = arith.addf %180, %179 : vector<8x128xf32>
    %182 = arith.divf %180, %181 : vector<8x128xf32>
    %183 = arith.select %14, %177, %182 : vector<8x128xi1>, vector<8x128xf32>
    %184 = vector.extract_strided_slice %183 {offsets = [0, 0], sizes = [8, 32], strides = [1, 1]} : vector<8x128xf32> to vector<8x32xf32>
    %185 = vector.extract_strided_slice %183 {offsets = [0, 32], sizes = [8, 32], strides = [1, 1]} : vector<8x128xf32> to vector<8x32xf32>
    %186 = vector.extract_strided_slice %183 {offsets = [0, 64], sizes = [8, 32], strides = [1, 1]} : vector<8x128xf32> to vector<8x32xf32>
    %187 = vector.extract_strided_slice %183 {offsets = [0, 96], sizes = [8, 32], strides = [1, 1]} : vector<8x128xf32> to vector<8x32xf32>
    %188 = arith.mulf %185, %168 : vector<8x32xf32>
    %189 = arith.mulf %184, %186 : vector<8x32xf32>
    %190 = arith.addf %188, %189 : vector<8x32xf32>
    %191 = math.tanh %190 : vector<8x32xf32>
    %192 = arith.mulf %187, %191 : vector<8x32xf32>
    %c8_i32_43 = arith.constant 8 : i32
    %c7 = arith.constant 7 : index
    %c0_44 = arith.constant 0 : index
    %c0_45 = arith.constant 0 : index
    %193 = vector.load %arg1[%c7, %c0_44, %c0_45] : memref<8x8x64xf32, #tpu.memory_space<vmem>>, vector<1x8x64xf32>
    %194 = vector.shape_cast %193 : vector<1x8x64xf32> to vector<8x64xf32>
    %c0_46 = arith.constant 0 : index
    %c0_47 = arith.constant 0 : index
    %195 = vector.load %arg5[%c0_46, %c0_47] : memref<64x128xf32, #tpu.memory_space<vmem>>, vector<64x128xf32>
    %cst_48 = arith.constant dense<0.000000e+00> : vector<8x128xf32>
    %196 = tpu.matmul %194, %195, %cst_48 {dimension_numbers = #tpu.dot_dimension_numbers<[1], [0], [0], [1], [0, 0, 1, 1], [], []>} : vector<8x64xf32>, vector<64x128xf32>, vector<8x128xf32> -> vector<8x128xf32>
    %c0_49 = arith.constant 0 : index
    %c0_50 = arith.constant 0 : index
    %197 = vector.load %arg6[%c0_49, %c0_50] : memref<1x128xf32, #tpu.memory_space<vmem>>, vector<1x128xf32>
    %198 = vector.broadcast %197 : vector<1x128xf32> to vector<8x128xf32>
    %199 = arith.addf %196, %198 : vector<8x128xf32>
    %200 = math.tanh %199 : vector<8x128xf32>
    %201 = arith.negf %199 : vector<8x128xf32>
    %202 = math.exp %201 : vector<8x128xf32>
    %cst_51 = arith.constant 1.000000e+00 : f32
    %203 = vector.broadcast %cst_51 : f32 to vector<8x128xf32>
    %204 = arith.addf %203, %202 : vector<8x128xf32>
    %205 = arith.divf %203, %204 : vector<8x128xf32>
    %206 = arith.select %14, %200, %205 : vector<8x128xi1>, vector<8x128xf32>
    %207 = vector.extract_strided_slice %206 {offsets = [0, 0], sizes = [8, 32], strides = [1, 1]} : vector<8x128xf32> to vector<8x32xf32>
    %208 = vector.extract_strided_slice %206 {offsets = [0, 64], sizes = [8, 32], strides = [1, 1]} : vector<8x128xf32> to vector<8x32xf32>
    %209 = vector.extract_strided_slice %206 {offsets = [0, 96], sizes = [8, 32], strides = [1, 1]} : vector<8x128xf32> to vector<8x32xf32>
    %210 = arith.mulf %207, %208 : vector<8x32xf32>
    %211 = math.tanh %210 : vector<8x32xf32>
    %212 = arith.mulf %209, %211 : vector<8x32xf32>
    %c0_52 = arith.constant 0 : index
    %c0_53 = arith.constant 0 : index
    %213 = vector.load %arg7[%c0_52, %c0_53] : memref<1x32xf32, #tpu.memory_space<vmem>>, vector<1x32xf32>
    %214 = vector.broadcast %213 : vector<1x32xf32> to vector<8x32xf32>
    %215 = arith.mulf %192, %214 : vector<8x32xf32>
    %c0_54 = arith.constant 0 : index
    %c0_55 = arith.constant 0 : index
    %216 = vector.load %arg8[%c0_54, %c0_55] : memref<1x32xf32, #tpu.memory_space<vmem>>, vector<1x32xf32>
    %217 = vector.broadcast %216 : vector<1x32xf32> to vector<8x32xf32>
    %218 = arith.addf %215, %217 : vector<8x32xf32>
    %c0_56 = arith.constant 0 : index
    %c0_57 = arith.constant 0 : index
    %219 = vector.load %arg9[%c0_56, %c0_57] : memref<1x32xf32, #tpu.memory_space<vmem>>, vector<1x32xf32>
    %220 = vector.broadcast %219 : vector<1x32xf32> to vector<8x32xf32>
    %221 = arith.mulf %212, %220 : vector<8x32xf32>
    %c0_58 = arith.constant 0 : index
    %c0_59 = arith.constant 0 : index
    %222 = vector.load %arg10[%c0_58, %c0_59] : memref<1x32xf32, #tpu.memory_space<vmem>>, vector<1x32xf32>
    %223 = vector.broadcast %222 : vector<1x32xf32> to vector<8x32xf32>
    %224 = arith.addf %221, %223 : vector<8x32xf32>
    %c0_60 = arith.constant 0 : index
    %c0_61 = arith.constant 0 : index
    %225 = vector.load %arg11[%c0_60, %c0_61] : memref<32x128xf32, #tpu.memory_space<vmem>>, vector<32x128xf32>
    %cst_62 = arith.constant dense<0.000000e+00> : vector<8x128xf32>
    %226 = tpu.matmul %218, %225, %cst_62 {dimension_numbers = #tpu.dot_dimension_numbers<[1], [0], [0], [1], [0, 0, 1, 1], [], []>} : vector<8x32xf32>, vector<32x128xf32>, vector<8x128xf32> -> vector<8x128xf32>
    %c0_63 = arith.constant 0 : index
    %c0_64 = arith.constant 0 : index
    %227 = vector.load %arg12[%c0_63, %c0_64] : memref<32x128xf32, #tpu.memory_space<vmem>>, vector<32x128xf32>
    %cst_65 = arith.constant dense<0.000000e+00> : vector<8x128xf32>
    %228 = tpu.matmul %224, %227, %cst_65 {dimension_numbers = #tpu.dot_dimension_numbers<[1], [0], [0], [1], [0, 0, 1, 1], [], []>} : vector<8x32xf32>, vector<32x128xf32>, vector<8x128xf32> -> vector<8x128xf32>
    %229 = arith.addf %226, %228 : vector<8x128xf32>
    %c0_66 = arith.constant 0 : index
    %c0_67 = arith.constant 0 : index
    %230 = vector.load %arg13[%c0_66, %c0_67] : memref<1x128xf32, #tpu.memory_space<vmem>>, vector<1x128xf32>
    %231 = vector.broadcast %230 : vector<1x128xf32> to vector<8x128xf32>
    %232 = arith.addf %229, %231 : vector<8x128xf32>
    %c0_68 = arith.constant 0 : index
    %c0_69 = arith.constant 0 : index
    %233 = vector.load %arg14[%c0_68, %c0_69] : memref<8x128xf32, #tpu.memory_space<vmem>>, vector<8x128xf32>
    tpu.vector_store %arg14[%c0_68, %c0_69], %232 {strides = array<i32>} : memref<8x128xf32, #tpu.memory_space<vmem>>, vector<8x128xf32>,
    return
  }
  func.func @transform_0(%arg0: i32) -> (i32, i32, i32) {
    %c0_i32 = arith.constant 0 : i32
    %c0_i32_0 = arith.constant 0 : i32
    %c0_i32_1 = arith.constant 0 : i32
    return %c0_i32, %arg0, %c0_i32_0 : i32, i32, i32
  }
  func.func @transform_1(%arg0: i32) -> (i32, i32) {
    %c0_i32 = arith.constant 0 : i32
    %c0_i32_0 = arith.constant 0 : i32
    %c0_i32_1 = arith.constant 0 : i32
    return %c0_i32, %c0_i32_0 : i32, i32
  }
  func.func @transform_2(%arg0: i32) -> (i32, i32) {
    %c0_i32 = arith.constant 0 : i32
    %c0_i32_0 = arith.constant 0 : i32
    %c0_i32_1 = arith.constant 0 : i32
    return %c0_i32, %c0_i32_0 : i32, i32
  }
  func.func @transform_3(%arg0: i32) -> (i32, i32) {
    %c0_i32 = arith.constant 0 : i32
    %c0_i32_0 = arith.constant 0 : i32
    %c0_i32_1 = arith.constant 0 : i32
    return %c0_i32, %c0_i32_0 : i32, i32
  }
  func.func @transform_4(%arg0: i32) -> (i32, i32) {
    %c0_i32 = arith.constant 0 : i32
    %c0_i32_0 = arith.constant 0 : i32
    %c0_i32_1 = arith.constant 0 : i32
    return %c0_i32, %c0_i32_0 : i32, i32
  }
  func.func @transform_5(%arg0: i32) -> (i32, i32) {
    %c0_i32 = arith.constant 0 : i32
    %c0_i32_0 = arith.constant 0 : i32
    %c0_i32_1 = arith.constant 0 : i32
    return %c0_i32, %c0_i32_0 : i32, i32
  }
  func.func @transform_6(%arg0: i32) -> (i32, i32) {
    %c0_i32 = arith.constant 0 : i32
    %c0_i32_0 = arith.constant 0 : i32
    %c0_i32_1 = arith.constant 0 : i32
    return %c0_i32, %c0_i32_0 : i32, i32
  }
  func.func @transform_7(%arg0: i32) -> (i32, i32) {
    %c0_i32 = arith.constant 0 : i32
    %c0_i32_0 = arith.constant 0 : i32
    %c0_i32_1 = arith.constant 0 : i32
    return %c0_i32, %c0_i32_0 : i32, i32
  }
  func.func @transform_8(%arg0: i32) -> (i32, i32) {
    %c0_i32 = arith.constant 0 : i32
    %c0_i32_0 = arith.constant 0 : i32
    %c0_i32_1 = arith.constant 0 : i32
    return %c0_i32, %c0_i32_0 : i32, i32
  }
  func.func @transform_9(%arg0: i32) -> (i32, i32) {
    %c0_i32 = arith.constant 0 : i32
    %c0_i32_0 = arith.constant 0 : i32
    %c0_i32_1 = arith.constant 0 : i32
    return %c0_i32, %c0_i32_0 : i32, i32
  }
  func.func @transform_10(%arg0: i32) -> (i32, i32) {
    %c0_i32 = arith.constant 0 : i32
    %c0_i32_0 = arith.constant 0 : i32
    %c0_i32_1 = arith.constant 0 : i32
    return %c0_i32, %c0_i32_0 : i32, i32
  }
  func.func @transform_11(%arg0: i32) -> (i32, i32) {
    %c0_i32 = arith.constant 0 : i32
    %c0_i32_0 = arith.constant 0 : i32
    %c0_i32_1 = arith.constant 0 : i32
    return %c0_i32, %c0_i32_0 : i32, i32
  }
  func.func @transform_12(%arg0: i32) -> (i32, i32) {
    %c0_i32 = arith.constant 0 : i32
    %c0_i32_0 = arith.constant 0 : i32
    %c0_i32_1 = arith.constant 0 : i32
    return %c0_i32, %c0_i32_0 : i32, i32
  }
  func.func @transform_13(%arg0: i32) -> (i32, i32) {
    %c0_i32 = arith.constant 0 : i32
    %c0_i32_0 = arith.constant 0 : i32
    return %arg0, %c0_i32 : i32, i32
  }
}

</mosaic_0001>

<bundles_post_ra>
// kernel: tpu_custom_call.1
= control target key start
LH: loop header
LB: loop body
LE: loop exit
PB: predicated region body
PF: predicated region fallthrough
CT: control target
= control target key end

     0   :  { %18 = vsyncpa [#allocation4], 0  ;;  %s2316_s0 = inlined_call_operand.hbm [shape: f32[8,8,64], index: 0, kind: input, shape index: {}]   ;;  %s2317_s1 = inlined_call_operand.hbm [shape: f32[64,128], index: 1, kind: input, shape index: {}]   ;;  %s2318_s2 = inlined_call_operand.hbm [shape: f32[32,128], index: 2, kind: input, shape index: {}]   ;;  %s2319_s3 = inlined_call_operand.vmem [shape: f32[1,128], index: 3, kind: input, shape index: {}]   ;;  %s2320_s4 = inlined_call_operand.hbm [shape: f32[64,128], index: 4, kind: input, shape index: {}]   ;;  %s2321_s5 = inlined_call_operand.vmem [shape: f32[1,128], index: 5, kind: input, shape index: {}]   ;;  %s2322_s6 = inlined_call_operand.vmem [shape: f32[1,32], index: 6, kind: input, shape index: {}]   ;;  %s2323_s7 = inlined_call_operand.vmem [shape: f32[1,32], index: 7, kind: input, shape index: {}]   ;;  %s2324_s8 = inlined_call_operand.vmem [shape: f32[1,32], index: 8, kind: input, shape index: {}]   ;;  %s2325_s9 = inlined_call_operand.vmem [shape: f32[1,32], index: 9, kind: input, shape index: {}]   ;;  %s2326_s10 = inlined_call_operand.hbm [shape: f32[32,128], index: 10, kind: input, shape index: {}]   ;;  %s2327_s11 = inlined_call_operand.hbm [shape: f32[32,128], index: 11, kind: input, shape index: {}]   ;;  %s2328_s12 = inlined_call_operand.vmem [shape: f32[1,128], index: 12, kind: input, shape index: {}]   ;;  %s2329_s13 = inlined_call_operand.hbm [shape: f32[8,128], index: 13, kind: output, shape index: {}]  }
   0x1   :  { %19 = vsyncpa [#allocation7], 0 }
   0x2   :  { %20 = vsyncpa [#allocation10], 0 }
   0x3   :  { %21 = vsyncpa [#allocation13], 0 }
   0x4   :  { %22 = vsyncpa [#allocation5], 0  ;;  %s1955_s25 = smov [#allocation6]   ;;  %s1956_s27 = smov [#allocation9]  }
   0x5   :  { %s40_s26 = sshll.u32 %s1955_s25, 4  ;;  %s66_s28 = sshll.u32 %s1956_s27, 4  ;;  %s41_s26 = int_to_ptr.vmem [resolvable:$true] %s40_s26  ;;  %s67_s28 = int_to_ptr.vmem [resolvable:$true] %s66_s28 }
   0x6   :  { %s1813_s29 = scalar_lea.vmem %s41_s26, 1024  ;;  %p1818_p1 = scmp.lt.s32.totalorder %s41_s26, %s41_s26 }
   0x7   :  { %p1814_p0 = scmp.ne.s32.totalorder %s41_s26, %s1813_s29  ;;  %p1819_p2 = scmp.lt.s32.totalorder %s1813_s29, %s1813_s29 }
   0x9   :  { %p1820_p3 = por %p1819_p2, %p1818_p1 }
   0xb   :  { %p1821_p4 = pnand %p1820_p3, %p1814_p0 }
   0xd   :  { %1824 = shalt.err (!%p1821_p4)
}
   0xe   :  { %s1957_s30 = smov 128   ;;  %s1958_s14 = smov 8  }
   0xf   :  { %46 = dma.hbm_to_vmem [thread:$0]  %s2317_s1, 1024, %s41_s26, [#allocation7], %s1957_s30, %s1957_s30, %s1958_s14  }
  0x10   :  { %s1833_s17 = scalar_lea.vmem %s67_s28, 1024  ;;  %p1838_p6 = scmp.lt.s32.totalorder %s67_s28, %s67_s28 }
  0x11   :  { %p1834_p5 = scmp.ne.s32.totalorder %s67_s28, %s1833_s17  ;;  %p1839_p7 = scmp.lt.s32.totalorder %s1833_s17, %s1833_s17 }
  0x13   :  { %p1840_p8 = por %p1839_p7, %p1838_p6 }
  0x15   :  { %p1841_p9 = pnand %p1840_p8, %p1834_p5 }
  0x17   :  { %1844 = shalt.err (!%p1841_p9)
}
  0x18   :  { %72 = dma.hbm_to_vmem [thread:$0]  %s2320_s4, 1024, %s67_s28, [#allocation10], %s1957_s30, %s1957_s30, %s1958_s14  }
  0x19   :  { %s1959_s20 = smov [#allocation3]   ;;  %s1960_s22 = smov [#allocation8]  }
  0x1a   :  { %s28_s21 = sshll.u32 %s1959_s20, 4  ;;  %s52_s23 = sshll.u32 %s1960_s22, 4  ;;  %s29_s21 = int_to_ptr.vmem [resolvable:$true] %s28_s21  ;;  %s53_s23 = int_to_ptr.vmem [resolvable:$true] %s52_s23 }
  0x1b   :  { %s1853_s1 = scalar_lea.vmem %s29_s21, 1024  ;;  %p1858_p11 = scmp.lt.s32.totalorder %s29_s21, %s29_s21 }
  0x1c   :  { %p1854_p10 = scmp.ne.s32.totalorder %s29_s21, %s1853_s1  ;;  %p1859_p12 = scmp.lt.s32.totalorder %s1853_s1, %s1853_s1 }
  0x1e   :  { %p1860_p13 = por %p1859_p12, %p1858_p11 }
  0x20   :  { %p1861_p0 = pnand %p1860_p13, %p1854_p10 }
  0x22   :  { %1864 = shalt.err (!%p1861_p0)
}
  0x23   :  { %34 = dma.hbm_to_vmem [thread:$0]  %s2316_s0, 1024, %s29_s21, [#allocation4], %s1957_s30, %s1957_s30, %s1958_s14  }
  0x24   :  { %s1873_s4 = scalar_lea.vmem %s53_s23, 512  ;;  %p1878_p2 = scmp.lt.s32.totalorder %s53_s23, %s53_s23 }
  0x25   :  { %p1874_p1 = scmp.ne.s32.totalorder %s53_s23, %s1873_s4  ;;  %p1879_p3 = scmp.lt.s32.totalorder %s1873_s4, %s1873_s4 }
  0x27   :  { %p1880_p4 = por %p1879_p3, %p1878_p2 }
  0x29   :  { %p1881_p5 = pnand %p1880_p4, %p1874_p1 }
  0x2b   :  { %1884 = shalt.err (!%p1881_p5)
}
  0x2c   :  { %58 = dma.hbm_to_vmem [thread:$0]  %s2318_s2, 512, %s53_s23, [#allocation7], %s1957_s30, %s1957_s30, %s1958_s14  }
  0x2d   :  { %s1961_s28 = smov [#allocation11]   ;;  %s1962_s15 = smov [#allocation12]  }
  0x2e   :  { %s88_s29 = sshll.u32 %s1961_s28, 4  ;;  %s100_s16 = sshll.u32 %s1962_s15, 4  ;;  %s89_s29 = int_to_ptr.vmem [resolvable:$true] %s88_s29  ;;  %s101_s16 = int_to_ptr.vmem [resolvable:$true] %s100_s16 }
  0x2f   :  { %s1893_s0 = scalar_lea.vmem %s89_s29, 512  ;;  %p1898_p7 = scmp.lt.s32.totalorder %s89_s29, %s89_s29 }
  0x30   :  { %p1894_p6 = scmp.ne.s32.totalorder %s89_s29, %s1893_s0  ;;  %p1899_p8 = scmp.lt.s32.totalorder %s1893_s0, %s1893_s0 }
  0x32   :  { %p1900_p9 = por %p1899_p8, %p1898_p7 }
  0x34   :  { %p1901_p10 = pnand %p1900_p9, %p1894_p6 }
  0x36   :  { %1904 = shalt.err (!%p1901_p10)
}
  0x37   :  { %94 = dma.hbm_to_vmem [thread:$0]  %s2326_s10, 512, %s89_s29, [#allocation10], %s1957_s30, %s1957_s30, %s1958_s14  }
  0x38   :  { %s1913_s2 = scalar_lea.vmem %s101_s16, 512  ;;  %p1918_p12 = scmp.lt.s32.totalorder %s101_s16, %s101_s16 }
  0x39   :  { %p1914_p11 = scmp.ne.s32.totalorder %s101_s16, %s1913_s2  ;;  %p1919_p13 = scmp.lt.s32.totalorder %s1913_s2, %s1913_s2 }
  0x3b   :  { %p1920_p0 = por %p1919_p13, %p1918_p12 }
  0x3d   :  { %p1921_p1 = pnand %p1920_p0, %p1914_p11 }
  0x3f   :  { %1924 = shalt.err (!%p1921_p1)
}
  0x40   :  { %106 = dma.hbm_to_vmem [thread:$0]  %s2327_s11, 512, %s101_s16, [#allocation13], %s1957_s30, %s1957_s30, %s1958_s14  }
  0x41   :  { %1945 = dma.done.wait [#allocation4], 1024  }
  0x42   :  { %1946 = vsyncadd [#allocation4], 4294966272 }
  0x43   :  { %1947 = dma.done.wait [#allocation7], 1536  }
  0x44   :  { %1948 = vsyncadd [#allocation7], 4294965760 }
  0x45   :  { %1949 = dma.done.wait [#allocation10], 1536  }
  0x46   :  { %1950 = vsyncadd [#allocation10], 4294965760 }
  0x47   :  { %1951 = dma.done.wait [#allocation13], 512  }
  0x48   :  { %1952 = vsyncadd [#allocation13], 4294966784  ;;  %v1963_v0 = vmov 0.0   ;;  %vm1964_vm0 = vmmov 0   ;;  %v142_v1 = vld [vmem:[#allocation6 + $0x38] sm:$0xff]  ;;  %v141_v2 = vld [vmem:[#allocation6 + $0x30] sm:$0xff]  ;;  %v292_v25 = vlaneseq }
  0x49   :  { %1590 = vmatprep.subr.mxu1 %v1963_v0  ;;  %1598 = vmatprep.mubr.msk.f32.mxu1 %vm1964_vm0, %v1963_v0  ;;  %v140_v3 = vld [vmem:[#allocation6 + $0x28] sm:$0xff]  ;;  %v2078_v4 = vld [vmem:[#allocation8 + $0x18] sm:$0xff]  ;;  %v2080_v5 = vld [vmem:[#allocation8 + $0x10] sm:$0xff]  ;;  %vm150_vm1 = vcmask 523264   ;;  %s1966_s30 = smov 32   ;;  %vm298_vm5 = vcmask 261120  }
  0x4a   :  { %1562 = vmatprep.subr.mxu0 %v142_v1  ;;  %1591 = vmatpush3.msra.mxu1 %v2078_v4  ;;  %v139_v6 = vld [vmem:[#allocation6 + $0x20] sm:$0xff]  ;;  %v2085_v8 = vld [vmem:[#allocation8 + $0x8] sm:$0xff]  ;;  %v138_v9 = vld [vmem:[#allocation6 + $0x18] sm:$0xff]  ;;  %v293_v26 = vand.u32 127, %v292_v25  ;;  %s1968_s26 = smov [#allocation14]  }
  0x4b   :  { %1563 = vmatpush3.msra.mxu0 %v142_v1  ;;  %1592 = vmatprep.subr.mxu1 %v1963_v0  ;;  %v127_v7 = vld [vmem:[#allocation3] sm:$0xff]  ;;  %v137_v11 = vld [vmem:[#allocation6 + $0x10] sm:$0xff]  ;;  %v136_v12 = vld [vmem:[#allocation6 + $0x8] sm:$0xff]  ;;  %s1441_s27 = sshll.u32 %s1968_s26, 4  ;;  %s1442_s27 = int_to_ptr.vmem [resolvable:$true] %s1441_s27 }
  0x4c   :  { %1564 = vmatprep.subr.mxu0 %v141_v2  ;;  %1593 = vmatpush3.msra.mxu1 %v2080_v5  ;;  %v2089_v10 = vld [vmem:[#allocation8] sm:$0xff]  ;;  %v128_v14 = vld [vmem:[#allocation3 + $0x8] sm:$0xff]  ;;  %vm294_vm2 = vcmp.ge.s32.totalorder %v293_v26, 64  ;;  %vm295_vm3 = vcmp.lt.s32.totalorder %v293_v26, 96  ;;  %v129_v55 = vld [vmem:[#allocation3 + $0x10] sm:$0xff]  ;;  %s1925_s28 = scalar_lea.vmem %s1442_s27, 128  ;;  %p1930_p3 = scmp.lt.s32.totalorder %s1442_s27, %s1442_s27 }
  0x4d   :  { %1565 = vmatpush3.msra.mxu0 %v141_v2  ;;  %1594 = vmatprep.subr.mxu1 %v1963_v0  ;;  %v135_v13 = vld [vmem:[#allocation6] sm:$0xff]  ;;  %vm2122_vm4 = vmand %vm294_vm2, %vm295_vm3  ;;  %v130_v56 = vld [vmem:[#allocation3 + $0x18] sm:$0xff]  ;;  %p1926_p2 = scmp.ne.s32.totalorder %s1442_s27, %s1925_s28  ;;  %p1931_p4 = scmp.lt.s32.totalorder %s1925_s28, %s1925_s28 }
  0x4e   :  { %1566 = vmatprep.subr.mxu0 %v140_v3  ;;  %1578 = vmatprep.mubr.msk.f32.mxu0 %vm150_vm1, %v127_v7  ;;  %v2119_v18 = vld [vmem:[%s2319_s3] ss:$0 sm:$0xff]  ;;  %s1965_s3 = smov 64   ;;  %v1275_v27 = vld [vmem:[#allocation12 + $0x18] sm:$0xff] }
  0x4f   :  { %1567 = vmatpush3.msra.mxu0 %v140_v3  ;;  %1595 = vmatpush3.msra.mxu1 %v2085_v8  ;;  %p1932_p5 = por %p1931_p4, %p1930_p3 }
  0x50   :  { %1568 = vmatprep.subr.mxu0 %v139_v6  ;;  %1596 = vmatprep.subr.mxu1 %v1963_v0 }
  0x51   :  { %1569 = vmatpush3.msra.mxu0 %v139_v6  ;;  %1597 = vmatpush3.msra.mxu1 %v2089_v10  ;;  %p1933_p6 = pnand %p1932_p5, %p1926_p2 }
  0x52   :  { %1570 = vmatprep.subr.mxu0 %v138_v9  ;;  %1599 = vmatmul.mubr.f32.vlgmr.msra.gmra.mxu1 %v1963_v0 }
  0x53   :  { %1571 = vmatpush3.msra.mxu0 %v138_v9  ;;  %1601 = vmatprep.subr.mxu1 %v1963_v0 }
  0x54   :  { %1572 = vmatprep.subr.mxu0 %v137_v11  ;;  %1602 = vmatpush3.msra.mxu1 %v2078_v4 }
  0x55   :  { %1573 = vmatpush3.msra.mxu0 %v137_v11  ;;  %1603 = vmatprep.subr.mxu1 %v1963_v0 }
  0x56   :  { %1574 = vmatprep.subr.mxu0 %v136_v12  ;;  %1604 = vmatpush3.msra.mxu1 %v2080_v5 }
  0x57   :  { %1575 = vmatpush3.msra.mxu0 %v136_v12  ;;  %1605 = vmatprep.subr.mxu1 %v1963_v0 }
  0x58   :  { %1576 = vmatprep.subr.mxu0 %v135_v13  ;;  %1606 = vmatpush3.msra.mxu1 %v2085_v8 }
  0x59   :  { %1577 = vmatpush3.msra.mxu0 %v135_v13  ;;  %1607 = vmatprep.subr.mxu1 %v1963_v0 }
  0x5a   :  { %1579 = vmatmul.mubr.msk.f32.vlgmr.msra.gmra.mxu0 %vm150_vm1, %v128_v14  ;;  %1609 = vmatprep.mubr.msk.f32.mxu1 %vm1964_vm0, %v1963_v0 }
  0x5b   :  { %1608 = vmatpush3.msra.mxu1 %v2089_v10  ;;  %1623 = vmatprep.subr.mxu0 %v1963_v0 }
  0x5c   :  { %1612 = vmatprep.subr.mxu1 %v1963_v0  ;;  %1624 = vmatpush3.msra.mxu0 %v2078_v4 }
  0x5d   :  { %1625 = vmatprep.subr.mxu0 %v1963_v0  ;;  %1581 = vmatprep.mubr.msk.f32.mxu0 %vm150_vm1, %v129_v55 }
  0x5e   :  { %1626 = vmatpush3.msra.mxu0 %v2080_v5 }
  0x5f   :  { %1627 = vmatprep.subr.mxu0 %v1963_v0  ;;  %1582 = vmatmul.mubr.msk.f32.gmra.mxu0 %vm150_vm1, %v130_v56 }
  0x60   :  { %1628 = vmatpush3.msra.mxu0 %v2085_v8 }
  0x61   :  { %1629 = vmatprep.subr.mxu0 %v1963_v0 }
  0x62   :  { %1630 = vmatpush3.msra.mxu0 %v2089_v10 }
  0x63   :  { %1645 = vmatprep.subr.mxu0 %v1963_v0 }
 0x112   :  { %v368_v15 = vpop.f32.mrf.mxu1 }
 0x114   :  { %v1600_v16 = vpop.f32.mrf.mxu1 }
 0x11a   :  { %v1580_v17 = vpop.f32.mrf.mxu0 }
 0x11b   :  { %v247_v40 = vadd.f32 %v1580_v17, %v2119_v18 }
 0x11c   :  { %v241_v19 = vpop.f32.mrf.mxu0 }
 0x11d   :  { %v242_v20 = vadd.f32 %v2119_v18, %v241_v19 }
 0x11f   :  { %v372_v21 = vadd.f32 %v368_v15, %v242_v20  ;;  %v1583_v61 = vpop.f32.mrf.mxu0  ;;  %v131_v20 = vld [vmem:[#allocation3 + $0x20] sm:$0xff] }
 0x120   :  { %1584 = vmatprep.mubr.msk.f32.mxu0 %vm150_vm1, %v131_v20 }
 0x121   :  { %v1462_v22 = vmul.f32 -1.442695, %v372_v21  ;;  %v251_v62 = vpop.f32.mrf.mxu0 }
 0x122   :  { %v252_v63 = vadd.f32 %v2119_v18, %v251_v62 }
 0x123   :  { %1733 = vpow2.f32 %v1462_v22  ;;  %v133_v22 = vld [vmem:[#allocation3 + $0x30] sm:$0xff] }
 0x124   :  { %1735 = vtanh.f32 %v372_v21  ;;  %v132_v21 = vld [vmem:[#allocation3 + $0x28] sm:$0xff] }
 0x125   :  { %1585 = vmatmul.mubr.msk.f32.gmra.mxu0 %vm150_vm1, %v132_v21 }
 0x126   :  { %1587 = vmatprep.mubr.msk.f32.mxu0 %vm150_vm1, %v133_v22 }
 0x130   :  { %v1734_v23 = vpop.eup %1733 }
 0x131   :  { %v377_v24 = vadd.f32 1.0, %v1734_v23  ;;  %v1736_v28 = vpop.eup %1735  ;;  %v2171_v23 = vld [vmem:[#allocation3 + $0x38] sm:$0xff] }
 0x132   :  { %1588 = vmatmul.mubr.msk.f32.gmra.mxu0 %vm150_vm1, %v2171_v23 }
 0x133   :  { %1737 = vrcp.f32 %v377_v24  ;;  %1631 = vmatprep.mubr.msk.f32.mxu0 %vm1964_vm0, %v1963_v0 }
 0x140   :  { %v1738_v29 = vpop.eup %1737 }
 0x141   :  { %v380_v30 = vsel %vm2122_vm4, %v1736_v28, %v1738_v29 }
 0x142   :  { %383 = vrot.lane.b32.xlu0 %v380_v30, %s1965_s3  ;;  %v381_v33 = vmul.f32 0.0, %v380_v30 }
 0x1b4   :  { %v384_v31 = vpop.permute.xlu0 %383 }
 0x1b5   :  { %v386_v32 = vmul.f32 %v384_v31, %v380_v30 }
 0x1b7   :  { %388 = vrot.lane.b32.xlu0 %v386_v32, %s1966_s30 }
 0x1e5   :  { %v2190_v29 = vpop.f32.mrf.mxu0 }
 0x229   :  { %v389_v34 = vpop.permute.xlu0 %388 }
 0x22a   :  { %v391_v35 = vadd.f32 %v389_v34, %v381_v33  ;;  %v257_v33 = vadd.f32 %v1583_v61, %v2119_v18 }
 0x22c   :  { %1739 = vtanh.f32 %v391_v35 }
 0x239   :  { %v1740_v36 = vpop.eup %1739 }
 0x23a   :  { %394 = vrot.lane.b32.xlu1 %v1740_v36, %s1965_s3 }
 0x2ac   :  { %v395_v37 = vpop.permute.xlu1 %394 }
 0x2ad   :  { %v397_v38 = vmul.f32 %v395_v37, %v380_v30  ;;  %v261_v30 = vpop.f32.mrf.mxu0 }
 0x2af   :  { %401 = vrot.lane.b32.xlu1 %v397_v38, %s1966_s30  ;;  %v2192_v31 = vpop.f32.mrf.mxu0 }
 0x2b1   :  { %v2194_v32 = vpop.f32.mrf.mxu0 }
 0x321   :  { %v402_v39 = vpop.permute.xlu1 %401 }
 0x322   :  { %1610 = vmatmul.mubr.msk.f32.vlgmr.msra.gmra.mxu1 %vm298_vm5, %v402_v39 }
 0x323   :  { %1613 = vmatpush3.msra.mxu1 %v2078_v4  ;;  %1620 = vmatprep.mubr.msk.f32.mxu1 %vm1964_vm0, %v1963_v0 }
 0x324   :  { %1614 = vmatprep.subr.mxu1 %v1963_v0 }
 0x325   :  { %1615 = vmatpush3.msra.mxu1 %v2080_v5 }
 0x326   :  { %1616 = vmatprep.subr.mxu1 %v1963_v0 }
 0x327   :  { %1617 = vmatpush3.msra.mxu1 %v2085_v8 }
 0x328   :  { %1618 = vmatprep.subr.mxu1 %v1963_v0 }
 0x329   :  { %1619 = vmatpush3.msra.mxu1 %v2089_v10 }
 0x32a   :  { %1634 = vmatprep.subr.mxu1 %v1963_v0 }
 0x3e2   :  { %v471_v41 = vpop.f32.mrf.mxu1 }
 0x3e3   :  { %v475_v42 = vadd.f32 %v471_v41, %v247_v40 }
 0x3e4   :  { %v1611_v43 = vpop.f32.mrf.mxu1 }
 0x3e5   :  { %v1464_v44 = vmul.f32 -1.442695, %v475_v42 }
 0x3e7   :  { %1741 = vpow2.f32 %v1464_v44 }
 0x3e8   :  { %1743 = vtanh.f32 %v475_v42 }
 0x3f4   :  { %v1742_v45 = vpop.eup %1741 }
 0x3f5   :  { %v480_v46 = vadd.f32 1.0, %v1742_v45  ;;  %v1744_v47 = vpop.eup %1743 }
 0x3f7   :  { %1745 = vrcp.f32 %v480_v46 }
 0x404   :  { %v1746_v48 = vpop.eup %1745 }
 0x405   :  { %v483_v49 = vsel %vm2122_vm4, %v1744_v47, %v1746_v48 }
 0x406   :  { %486 = vrot.lane.b32.xlu0 %v483_v49, %s1965_s3  ;;  %v484_v52 = vmul.f32 %v483_v49, %v391_v35 }
 0x478   :  { %v487_v50 = vpop.permute.xlu0 %486 }
 0x479   :  { %v489_v51 = vmul.f32 %v487_v50, %v483_v49 }
 0x47b   :  { %491 = vrot.lane.b32.xlu1 %v489_v51, %s1966_s30 }
 0x4ed   :  { %v492_v53 = vpop.permute.xlu1 %491 }
 0x4ee   :  { %v494_v54 = vadd.f32 %v492_v53, %v484_v52  ;;  %v262_v52 = vadd.f32 %v2119_v18, %v261_v30  ;;  %v272_v30 = vadd.f32 %v2119_v18, %v2194_v32  ;;  %v1128_v32 = vld [vmem:[#allocation9 + $0x38] sm:$0xff] }
 0x4f0   :  { %1747 = vtanh.f32 %v494_v54 }
 0x4fd   :  { %v1748_v57 = vpop.eup %1747 }
 0x4fe   :  { %497 = vrot.lane.b32.xlu0 %v1748_v57, %s1965_s3 }
 0x570   :  { %v498_v58 = vpop.permute.xlu0 %497 }
 0x571   :  { %v500_v59 = vmul.f32 %v498_v58, %v483_v49 }
 0x573   :  { %504 = vrot.lane.b32.xlu1 %v500_v59, %s1966_s30 }
 0x5e5   :  { %v505_v60 = vpop.permute.xlu1 %504 }
 0x5e6   :  { %1621 = vmatmul.mubr.msk.f32.vlgmr.msra.gmra.mxu1 %vm298_vm5, %v505_v60 }
 0x5e7   :  { %1635 = vmatpush3.msra.mxu1 %v2078_v4  ;;  %1642 = vmatprep.mubr.msk.f32.mxu1 %vm1964_vm0, %v1963_v0 }
 0x5e8   :  { %1636 = vmatprep.subr.mxu1 %v1963_v0 }
 0x5e9   :  { %1637 = vmatpush3.msra.mxu1 %v2080_v5 }
 0x5ea   :  { %1638 = vmatprep.subr.mxu1 %v1963_v0 }
 0x5eb   :  { %1639 = vmatpush3.msra.mxu1 %v2085_v8 }
 0x5ec   :  { %1640 = vmatprep.subr.mxu1 %v1963_v0 }
 0x5ed   :  { %1641 = vmatpush3.msra.mxu1 %v2089_v10 }
 0x5ee   :  { %1656 = vmatprep.subr.mxu1 %v1963_v0 }
 0x6a6   :  { %v574_v1 = vpop.f32.mrf.mxu1 }
 0x6a7   :  { %v578_v2 = vadd.f32 %v574_v1, %v252_v63 }
 0x6a8   :  { %v1622_v3 = vpop.f32.mrf.mxu1 }
 0x6a9   :  { %v1466_v6 = vmul.f32 -1.442695, %v578_v2 }
 0x6ab   :  { %1749 = vpow2.f32 %v1466_v6 }
 0x6ac   :  { %1751 = vtanh.f32 %v578_v2 }
 0x6b8   :  { %v1750_v7 = vpop.eup %1749 }
 0x6b9   :  { %v583_v9 = vadd.f32 1.0, %v1750_v7  ;;  %v1752_v11 = vpop.eup %1751 }
 0x6bb   :  { %1753 = vrcp.f32 %v583_v9 }
 0x6c8   :  { %v1754_v12 = vpop.eup %1753 }
 0x6c9   :  { %v586_v13 = vsel %vm2122_vm4, %v1752_v11, %v1754_v12 }
 0x6ca   :  { %589 = vrot.lane.b32.xlu0 %v586_v13, %s1965_s3  ;;  %v587_v16 = vmul.f32 %v586_v13, %v494_v54 }
 0x73c   :  { %v590_v14 = vpop.permute.xlu0 %589 }
 0x73d   :  { %v592_v15 = vmul.f32 %v590_v14, %v586_v13 }
 0x73f   :  { %594 = vrot.lane.b32.xlu1 %v592_v15, %s1966_s30 }
 0x7b1   :  { %v595_v17 = vpop.permute.xlu1 %594 }
 0x7b2   :  { %v597_v19 = vadd.f32 %v595_v17, %v587_v16 }
 0x7b4   :  { %1755 = vtanh.f32 %v597_v19 }
 0x7c1   :  { %v1756_v24 = vpop.eup %1755 }
 0x7c2   :  { %600 = vrot.lane.b32.xlu0 %v1756_v24, %s1965_s3 }
 0x834   :  { %v601_v25 = vpop.permute.xlu0 %600 }
 0x835   :  { %v603_v26 = vmul.f32 %v601_v25, %v586_v13 }
 0x837   :  { %607 = vrot.lane.b32.xlu1 %v603_v26, %s1966_s30 }
 0x8a9   :  { %v608_v28 = vpop.permute.xlu1 %607 }
 0x8aa   :  { %1632 = vmatmul.mubr.msk.f32.vlgmr.msra.gmra.mxu0 %vm298_vm5, %v608_v28 }
 0x8ab   :  { %1646 = vmatpush3.msra.mxu0 %v2078_v4  ;;  %1653 = vmatprep.mubr.msk.f32.mxu0 %vm1964_vm0, %v1963_v0 }
 0x8ac   :  { %1647 = vmatprep.subr.mxu0 %v1963_v0 }
 0x8ad   :  { %1648 = vmatpush3.msra.mxu0 %v2080_v5 }
 0x8ae   :  { %1649 = vmatprep.subr.mxu0 %v1963_v0 }
 0x8af   :  { %1650 = vmatpush3.msra.mxu0 %v2085_v8 }
 0x8b0   :  { %1651 = vmatprep.subr.mxu0 %v1963_v0 }
 0x8b1   :  { %1652 = vmatpush3.msra.mxu0 %v2089_v10 }
 0x8b2   :  { %1667 = vmatprep.subr.mxu0 %v1963_v0 }
 0x96a   :  { %v677_v34 = vpop.f32.mrf.mxu0 }
 0x96b   :  { %v681_v35 = vadd.f32 %v677_v34, %v257_v33 }
 0x96c   :  { %v1633_v36 = vpop.f32.mrf.mxu0 }
 0x96d   :  { %v1468_v37 = vmul.f32 -1.442695, %v681_v35 }
 0x96f   :  { %1757 = vpow2.f32 %v1468_v37 }
 0x970   :  { %1759 = vtanh.f32 %v681_v35 }
 0x97c   :  { %v1758_v38 = vpop.eup %1757 }
 0x97d   :  { %v686_v39 = vadd.f32 1.0, %v1758_v38  ;;  %v1760_v40 = vpop.eup %1759 }
 0x97f   :  { %1761 = vrcp.f32 %v686_v39 }
 0x98c   :  { %v1762_v41 = vpop.eup %1761 }
 0x98d   :  { %v689_v42 = vsel %vm2122_vm4, %v1760_v40, %v1762_v41 }
 0x98e   :  { %692 = vrot.lane.b32.xlu0 %v689_v42, %s1965_s3  ;;  %v690_v45 = vmul.f32 %v689_v42, %v597_v19 }
 0xa00   :  { %v693_v43 = vpop.permute.xlu0 %692 }
 0xa01   :  { %v695_v44 = vmul.f32 %v693_v43, %v689_v42 }
 0xa03   :  { %697 = vrot.lane.b32.xlu1 %v695_v44, %s1966_s30  ;;  %v1127_v44 = vld [vmem:[#allocation9 + $0x30] sm:$0xff] }
 0xa75   :  { %v698_v46 = vpop.permute.xlu1 %697 }
 0xa76   :  { %v700_v47 = vadd.f32 %v698_v46, %v690_v45  ;;  %v1126_v45 = vld [vmem:[#allocation9 + $0x28] sm:$0xff]  ;;  %v1125_v46 = vld [vmem:[#allocation9 + $0x20] sm:$0xff] }
 0xa78   :  { %1763 = vtanh.f32 %v700_v47 }
 0xa85   :  { %v1764_v48 = vpop.eup %1763 }
 0xa86   :  { %703 = vrot.lane.b32.xlu0 %v1764_v48, %s1965_s3  ;;  %v1123_v48 = vld [vmem:[#allocation9 + $0x10] sm:$0xff] }
 0xaf8   :  { %v704_v49 = vpop.permute.xlu0 %703 }
 0xaf9   :  { %v706_v50 = vmul.f32 %v704_v49, %v689_v42  ;;  %v1122_v49 = vld [vmem:[#allocation9 + $0x8] sm:$0xff] }
 0xafb   :  { %710 = vrot.lane.b32.xlu1 %v706_v50, %s1966_s30  ;;  %v1121_v50 = vld [vmem:[#allocation9] sm:$0xff] }
 0xb6d   :  { %v711_v51 = vpop.permute.xlu1 %710 }
 0xb6e   :  { %1643 = vmatmul.mubr.msk.f32.vlgmr.msra.gmra.mxu1 %vm298_vm5, %v711_v51 }
 0xb6f   :  { %1657 = vmatpush3.msra.mxu1 %v2078_v4  ;;  %1664 = vmatprep.mubr.msk.f32.mxu1 %vm1964_vm0, %v1963_v0 }
 0xb70   :  { %1658 = vmatprep.subr.mxu1 %v1963_v0 }
 0xb71   :  { %1659 = vmatpush3.msra.mxu1 %v2080_v5 }
 0xb72   :  { %1660 = vmatprep.subr.mxu1 %v1963_v0 }
 0xb73   :  { %1661 = vmatpush3.msra.mxu1 %v2085_v8 }
 0xb74   :  { %1662 = vmatprep.subr.mxu1 %v1963_v0 }
 0xb75   :  { %1663 = vmatpush3.msra.mxu1 %v2089_v10 }
 0xb76   :  { %1678 = vmatprep.subr.mxu1 %v1963_v0 }
 0xc2e   :  { %v780_v53 = vpop.f32.mrf.mxu1 }
 0xc2f   :  { %v784_v54 = vadd.f32 %v780_v53, %v262_v52 }
 0xc30   :  { %v1644_v55 = vpop.f32.mrf.mxu1 }
 0xc31   :  { %v1470_v56 = vmul.f32 -1.442695, %v784_v54  ;;  %v1477_v55 = vld [vmem:[%s2321_s5] ss:$0 sm:$0xff]  ;;  %s1967_s5 = smov 96  }
 0xc33   :  { %1765 = vpow2.f32 %v1470_v56 }
 0xc34   :  { %1767 = vtanh.f32 %v784_v54 }
 0xc40   :  { %v1766_v57 = vpop.eup %1765 }
 0xc41   :  { %v789_v58 = vadd.f32 1.0, %v1766_v57  ;;  %v1768_v59 = vpop.eup %1767 }
 0xc43   :  { %1769 = vrcp.f32 %v789_v58 }
 0xc50   :  { %v1770_v60 = vpop.eup %1769 }
 0xc51   :  { %v792_v61 = vsel %vm2122_vm4, %v1768_v59, %v1770_v60 }
 0xc52   :  { %795 = vrot.lane.b32.xlu0 %v792_v61, %s1965_s3  ;;  %v793_v1 = vmul.f32 %v792_v61, %v700_v47  ;;  %v1124_v47 = vld [vmem:[#allocation9 + $0x18] sm:$0xff] }
 0xcc4   :  { %v796_v62 = vpop.permute.xlu0 %795 }
 0xcc5   :  { %v798_v63 = vmul.f32 %v796_v62, %v792_v61 }
 0xcc7   :  { %800 = vrot.lane.b32.xlu1 %v798_v63, %s1966_s30 }
 0xd39   :  { %v801_v2 = vpop.permute.xlu1 %800 }
 0xd3a   :  { %v803_v3 = vadd.f32 %v801_v2, %v793_v1 }
 0xd3c   :  { %1771 = vtanh.f32 %v803_v3 }
 0xd49   :  { %v1772_v6 = vpop.eup %1771 }
 0xd4a   :  { %806 = vrot.lane.b32.xlu0 %v1772_v6, %s1965_s3 }
 0xdbc   :  { %v807_v7 = vpop.permute.xlu0 %806 }
 0xdbd   :  { %v809_v9 = vmul.f32 %v807_v7, %v792_v61 }
 0xdbf   :  { %813 = vrot.lane.b32.xlu1 %v809_v9, %s1966_s30 }
 0xe31   :  { %v814_v11 = vpop.permute.xlu1 %813 }
 0xe32   :  { %1654 = vmatmul.mubr.msk.f32.vlgmr.msra.gmra.mxu0 %vm298_vm5, %v814_v11  ;;  %v277_v11 = vadd.f32 %v2192_v31, %v2119_v18  ;;  %v1480_v31 = vld [vmem:[%s2322_s6] ss:$0 sm:$0xff] }
 0xe33   :  { %1668 = vmatpush3.msra.mxu0 %v2078_v4  ;;  %1675 = vmatprep.mubr.msk.f32.mxu0 %vm1964_vm0, %v1963_v0  ;;  %v267_v4 = vadd.f32 %v2190_v29, %v2119_v18 }
 0xe34   :  { %1669 = vmatprep.subr.mxu0 %v1963_v0 }
 0xe35   :  { %1670 = vmatpush3.msra.mxu0 %v2080_v5 }
 0xe36   :  { %1671 = vmatprep.subr.mxu0 %v1963_v0 }
 0xe37   :  { %1672 = vmatpush3.msra.mxu0 %v2085_v8 }
 0xe38   :  { %1673 = vmatprep.subr.mxu0 %v1963_v0 }
 0xe39   :  { %1674 = vmatpush3.msra.mxu0 %v2089_v10 }
 0xe3a   :  { %1697 = vmatprep.subr.mxu0 %v1963_v0 }
 0xef2   :  { %v883_v12 = vpop.f32.mrf.mxu0 }
 0xef3   :  { %v887_v13 = vadd.f32 %v883_v12, %v267_v4 }
 0xef4   :  { %v1655_v14 = vpop.f32.mrf.mxu0 }
 0xef5   :  { %v1472_v15 = vmul.f32 -1.442695, %v887_v13 }
 0xef7   :  { %1773 = vpow2.f32 %v1472_v15 }
 0xef8   :  { %1775 = vtanh.f32 %v887_v13 }
 0xf04   :  { %v1774_v16 = vpop.eup %1773 }
 0xf05   :  { %v892_v5 = vadd.f32 1.0, %v1774_v16  ;;  %v1776_v17 = vpop.eup %1775 }
 0xf07   :  { %1777 = vrcp.f32 %v892_v5  ;;  %v1483_v5 = vld [vmem:[%s2325_s9] ss:$0 sm:$0xff] }
 0xf14   :  { %v1778_v8 = vpop.eup %1777 }
 0xf15   :  { %v895_v19 = vsel %vm2122_vm4, %v1776_v17, %v1778_v8 }
 0xf16   :  { %898 = vrot.lane.b32.xlu0 %v895_v19, %s1965_s3  ;;  %v896_v21 = vmul.f32 %v895_v19, %v803_v3 }
 0xf88   :  { %v899_v10 = vpop.permute.xlu0 %898 }
 0xf89   :  { %v901_v20 = vmul.f32 %v899_v10, %v895_v19 }
 0xf8b   :  { %903 = vrot.lane.b32.xlu1 %v901_v20, %s1966_s30  ;;  %v1482_v20 = vld [vmem:[%s2324_s8] ss:$0 sm:$0xff] }
 0xffd   :  { %v904_v22 = vpop.permute.xlu1 %903 }
 0xffe   :  { %v906_v24 = vadd.f32 %v904_v22, %v896_v21  ;;  %v1274_v21 = vld [vmem:[#allocation12 + $0x10] sm:$0xff]  ;;  %v1273_v22 = vld [vmem:[#allocation12 + $0x8] sm:$0xff] }
0x1000   :  { %1779 = vtanh.f32 %v906_v24 }
0x100d   :  { %v1780_v25 = vpop.eup %1779 }
0x100e   :  { %909 = vrot.lane.b32.xlu0 %v1780_v25, %s1965_s3 }
0x1080   :  { %v910_v26 = vpop.permute.xlu0 %909 }
0x1081   :  { %v912_v28 = vmul.f32 %v910_v26, %v895_v19 }
0x1083   :  { %916 = vrot.lane.b32.xlu1 %v912_v28, %s1966_s30 }
0x10f5   :  { %v917_v29 = vpop.permute.xlu1 %916 }
0x10f6   :  { %1665 = vmatmul.mubr.msk.f32.vlgmr.msra.gmra.mxu1 %vm298_vm5, %v917_v29 }
0x10f7   :  { %1694 = vmatprep.mubr.msk.f32.mxu1 %vm1964_vm0, %v1963_v0  ;;  %1679 = vmatpush3.msra.mxu1 %v1128_v32  ;;  %v1268_v32 = vld [vmem:[#allocation11] sm:$0xff] }
0x10f8   :  { %1680 = vmatprep.subr.mxu1 %v1963_v0 }
0x10f9   :  { %1681 = vmatpush3.msra.mxu1 %v1127_v44 }
0x10fa   :  { %1682 = vmatprep.subr.mxu1 %v1963_v0 }
0x10fb   :  { %1683 = vmatpush3.msra.mxu1 %v1126_v45 }
0x10fc   :  { %1684 = vmatprep.subr.mxu1 %v1963_v0 }
0x10fd   :  { %1685 = vmatpush3.msra.mxu1 %v1125_v46 }
0x10fe   :  { %1686 = vmatprep.subr.mxu1 %v1963_v0 }
0x10ff   :  { %1687 = vmatpush3.msra.mxu1 %v1124_v47 }
0x1100   :  { %1688 = vmatprep.subr.mxu1 %v1963_v0 }
0x1101   :  { %1689 = vmatpush3.msra.mxu1 %v1123_v48 }
0x1102   :  { %1690 = vmatprep.subr.mxu1 %v1963_v0 }
0x1103   :  { %1691 = vmatpush3.msra.mxu1 %v1122_v49 }
0x1104   :  { %1692 = vmatprep.subr.mxu1 %v1963_v0 }
0x1105   :  { %1693 = vmatpush3.msra.mxu1 %v1121_v50 }
0x1106   :  { %1695 = vmatmul.mubr.msk.f32.vlgmr.msra.gmra.mxu1 %vm150_vm1, %v2171_v23 }
0x11b6   :  { %v986_v33 = vpop.f32.mrf.mxu1 }
0x11b7   :  { %v990_v34 = vadd.f32 %v986_v33, %v272_v30 }
0x11b8   :  { %v1666_v35 = vpop.f32.mrf.mxu1 }
0x11b9   :  { %v1474_v36 = vmul.f32 -1.442695, %v990_v34 }
0x11bb   :  { %1781 = vpow2.f32 %v1474_v36 }
0x11bc   :  { %1783 = vtanh.f32 %v990_v34 }
0x11c6   :  { %v1205_v56 = vpop.f32.mrf.mxu1 }
0x11c7   :  { %v1206_v57 = vadd.f32 %v1477_v55, %v1205_v56 }
0x11c8   :  { %v1782_v37 = vpop.eup %1781  ;;  %v1696_v58 = vpop.f32.mrf.mxu1 }
0x11c9   :  { %v995_v38 = vadd.f32 1.0, %v1782_v37  ;;  %v1784_v39 = vpop.eup %1783  ;;  %v1479_v59 = vmul.f32 -1.442695, %v1206_v57 }
0x11cb   :  { %1785 = vrcp.f32 %v995_v38  ;;  %v1481_v38 = vld [vmem:[%s2323_s7] ss:$0 sm:$0xff] }
0x11d8   :  { %v1786_v40 = vpop.eup %1785 }
0x11d9   :  { %v998_v41 = vsel %vm2122_vm4, %v1784_v39, %v1786_v40  ;;  %v1271_v40 = vld [vmem:[#allocation11 + $0x18] sm:$0xff] }
0x11da   :  { %1001 = vrot.lane.b32.xlu0 %v998_v41, %s1965_s3  ;;  %v999_v51 = vmul.f32 %v998_v41, %v906_v24  ;;  %v1272_v24 = vld [vmem:[#allocation12] sm:$0xff] }
0x124c   :  { %v1002_v42 = vpop.permute.xlu0 %1001 }
0x124d   :  { %v1004_v43 = vmul.f32 %v1002_v42, %v998_v41  ;;  %v1270_v42 = vld [vmem:[#allocation11 + $0x10] sm:$0xff] }
0x124f   :  { %1006 = vrot.lane.b32.xlu1 %v1004_v43, %s1966_s30  ;;  %v1269_v43 = vld [vmem:[#allocation11 + $0x8] sm:$0xff] }
0x12c1   :  { %v1007_v52 = vpop.permute.xlu1 %1006 }
0x12c2   :  { %v2258_v53 = vadd.f32 %v1007_v52, %v999_v51 }
0x12c4   :  { %1787 = vtanh.f32 %v2258_v53 }
0x12c5   :  { %1789 = vpow2.f32 %v1479_v59 }
0x12c6   :  { %1791 = vtanh.f32 %v1206_v57 }
0x12d1   :  { %v1788_v54 = vpop.eup %1787 }
0x12d2   :  { %1012 = vrot.lane.b32.xlu0 %v1788_v54, %s1965_s3  ;;  %v1790_v61 = vpop.eup %1789 }
0x12d3   :  { %v1213_v62 = vadd.f32 1.0, %v1790_v61  ;;  %v1792_v63 = vpop.eup %1791 }
0x12d5   :  { %1793 = vrcp.f32 %v1213_v62 }
0x12e2   :  { %v1794_v1 = vpop.eup %1793 }
0x12e3   :  { %v1216_v2 = vsel %vm2122_vm4, %v1792_v63, %v1794_v1 }
0x1344   :  { %v1013_v60 = vpop.permute.xlu0 %1012 }
0x1345   :  { %v1015_v23 = vmul.f32 %v1013_v60, %v998_v41 }
0x1347   :  { %1019 = vrot.lane.b32.xlu1 %v1015_v23, %s1966_s30 }
0x134b   :  { %1218 = vrot.lane.b32.xlu1 %v1216_v2, %s1965_s3 }
0x13b9   :  { %v1020_v3 = vpop.permute.xlu1 %1019 }
0x13ba   :  { %1676 = vmatmul.mubr.msk.f32.vlgmr.msra.gmra.mxu0 %vm298_vm5, %v1020_v3 }
0x13bb   :  { %1705 = vmatprep.mubr.msk.f32.mxu0 %vm1964_vm0, %v1963_v0  ;;  %1698 = vmatpush3.msra.mxu0 %v1275_v27 }
0x13bc   :  { %1699 = vmatprep.subr.mxu0 %v1963_v0 }
0x13bd   :  { %v1219_v6 = vpop.permute.xlu1 %1218  ;;  %1700 = vmatpush3.msra.mxu0 %v1274_v21 }
0x13be   :  { %v1221_v7 = vmul.f32 %v1219_v6, %v1216_v2  ;;  %1701 = vmatprep.subr.mxu0 %v1963_v0 }
0x13bf   :  { %1702 = vmatpush3.msra.mxu0 %v1273_v22 }
0x13c0   :  { %1795 = vtanh.f32 %v1221_v7  ;;  %1703 = vmatprep.subr.mxu0 %v1963_v0 }
0x13c1   :  { %1704 = vmatpush3.msra.mxu0 %v1272_v24 }
0x13c2   :  { %1708 = vmatprep.subr.mxu0 %v1963_v0 }
0x13cd   :  { %v1796_v9 = vpop.eup %1795 }
0x13ce   :  { %1224 = vrot.lane.b32.xlu1 %v1796_v9, %s1967_s5 }
0x13d2   :  { %1264 = vrot.lane.b32.xlu1 %v1483_v5, %s1967_s5 }
0x13d6   :  { %1234 = vrot.lane.b32.xlu1 %v1480_v31, %s1967_s5 }
0x1440   :  { %v1225_v26 = vpop.permute.xlu1 %1224 }
0x1441   :  { %v1227_v30 = vmul.f32 %v1225_v26, %v1216_v2 }
0x1444   :  { %v1265_v34 = vpop.permute.xlu1 %1264 }
0x1448   :  { %v1235_v39 = vpop.permute.xlu1 %1234 }
0x147a   :  { %v1089_v4 = vpop.f32.mrf.mxu0 }
0x147b   :  { %v1093_v12 = vadd.f32 %v1089_v4, %v277_v11 }
0x147c   :  { %v1677_v13 = vpop.f32.mrf.mxu0 }
0x147d   :  { %v1476_v14 = vmul.f32 -1.442695, %v1093_v12 }
0x147f   :  { %1797 = vpow2.f32 %v1476_v14 }
0x1480   :  { %1799 = vtanh.f32 %v1093_v12 }
0x148c   :  { %v1798_v15 = vpop.eup %1797 }
0x148d   :  { %v1098_v16 = vadd.f32 1.0, %v1798_v15  ;;  %v1800_v17 = vpop.eup %1799 }
0x148f   :  { %1801 = vrcp.f32 %v1098_v16 }
0x149c   :  { %v1802_v8 = vpop.eup %1801 }
0x149d   :  { %v1101_v18 = vsel %vm2122_vm4, %v1800_v17, %v1802_v8 }
0x149e   :  { %1104 = vrot.lane.b32.xlu0 %v1101_v18, %s1965_s3  ;;  %v1102_v25 = vmul.f32 %v1101_v18, %v2258_v53  ;;  %v1486_v53 = vld [vmem:[%s2328_s12] ss:$0 sm:$0xff] }
0x1510   :  { %v1105_v19 = vpop.permute.xlu0 %1104 }
0x1511   :  { %v1107_v10 = vmul.f32 %v1105_v19, %v1101_v18 }
0x1513   :  { %1109 = vrot.lane.b32.xlu0 %v1107_v10, %s1966_s30 }
0x1517   :  { %1254 = vrot.lane.b32.xlu0 %v1482_v20, %s1967_s5 }
0x1585   :  { %v1110_v28 = vpop.permute.xlu0 %1109 }
0x1586   :  { %v1112_v29 = vadd.f32 %v1110_v28, %v1102_v25 }
0x1588   :  { %1803 = vtanh.f32 %v1112_v29 }
0x1589   :  { %v1255_v33 = vpop.permute.xlu0 %1254 }
0x158a   :  { %v1257_v35 = vmul.f32 %v1255_v33, %v1227_v30 }
0x158c   :  { %v1267_v36 = vadd.f32 %v1265_v34, %v1257_v35 }
0x158e   :  { %1277 = vrot.lane.b32.xlu1 %v1267_v36, %s1966_s30 }
0x1595   :  { %v1804_v37 = vpop.eup %1803 }
0x1596   :  { %1115 = vrot.lane.b32.xlu0 %v1804_v37, %s1965_s3 }
0x159a   :  { %1244 = vrot.lane.b32.xlu0 %v1481_v38, %s1967_s5 }
0x1600   :  { %v1278_v41 = vpop.permute.xlu1 %1277 }
0x1601   :  { %1706 = vmatmul.mubr.msk.f32.vlgmr.msra.gmra.mxu0 %vm298_vm5, %v1278_v41 }
0x1602   :  { %1709 = vmatpush3.msra.mxu0 %v1271_v40  ;;  %1716 = vmatprep.mubr.msk.f32.mxu0 %vm1964_vm0, %v1963_v0 }
0x1603   :  { %1710 = vmatprep.subr.mxu0 %v1963_v0 }
0x1604   :  { %1711 = vmatpush3.msra.mxu0 %v1270_v42 }
0x1605   :  { %1712 = vmatprep.subr.mxu0 %v1963_v0 }
0x1606   :  { %1713 = vmatpush3.msra.mxu0 %v1269_v43 }
0x1607   :  { %1714 = vmatprep.subr.mxu0 %v1963_v0 }
0x1608   :  { %v1116_v44 = vpop.permute.xlu0 %1115  ;;  %1715 = vmatpush3.msra.mxu0 %v1268_v32 }
0x1609   :  { %v1118_v45 = vmul.f32 %v1116_v44, %v1101_v18 }
0x160b   :  { %v1237_v46 = vmul.f32 %v1235_v39, %v1118_v45 }
0x160c   :  { %v1245_v47 = vpop.permute.xlu0 %1244 }
0x160d   :  { %v1247_v48 = vadd.f32 %v1245_v47, %v1237_v46 }
0x160f   :  { %1352 = vrot.lane.b32.xlu0 %v1247_v48, %s1966_s30 }
0x1681   :  { %v1353_v49 = vpop.permute.xlu0 %1352 }
0x1682   :  { %1717 = vmatmul.mubr.msk.f32.vlgmr.msra.gmra.mxu0 %vm298_vm5, %v1353_v49 }
0x16c1   :  { %v1347_v50 = vpop.f32.mrf.mxu0 }
0x16c3   :  { %v1707_v51 = vpop.f32.mrf.mxu0 }
0x1742   :  { %v1422_v52 = vpop.f32.mrf.mxu0 }
0x1743   :  { %v1423_v0 = vadd.f32 %v1422_v52, %v1347_v50 }
0x1744   :  { %v1718_v54 = vpop.f32.mrf.mxu0 }
0x1745   :  { %v1433_v55 = vadd.f32 %v1486_v53, %v1423_v0 }
0x1747   :  { %1434 = vst [vmem:[#allocation14] sm:$0xff] %v1433_v55 }
0x1748   :  { %1936 = shalt.err (!%p1933_p6)
}
0x1749   :  { %1444 = dma.vmem_to_hbm [thread:$0]  %s1442_s27, 128, %s2329_s13, [#allocation5]  }
0x174a   :  { %1953 = dma.done.wait [#allocation5], 128  }
0x174b   :  { %1954 = vsyncadd [#allocation5], 4294967168 }
0x174c   :  { %1448 = vsyncpa [#allocation4], 1 }
0x174d   :  { %1449 = vsyncpa [#allocation7], 1 }
0x174e   :  { %1450 = vsyncpa [#allocation10], 1 }
0x174f   :  { %1451 = vsyncpa [#allocation13], 1 }
0x1750   :  { %1452 = vsyncpa [#allocation5], 1 }

</bundles_post_ra>
